<compile_context>
chip_gen: v6e
topology: v6e:2x2x1
jax: 0.10.0
libtpu: 0.0.40
codegen_flags: <defaults>
</compile_context>

<pallas_src>
import functools

import jax
import jax.numpy as jnp
from jax.experimental import pallas as pl
from jax.experimental.pallas import tpu as pltpu


def _round_up(x, m):
    return ((x + m - 1) // m) * m


def init_params(key, input_dim=(3, 64, 64), num_classes=3, eps=1e-5):
    """Torch-equivalent parameters with eval-mode BN expressed as per-feature
    scale/shift:  block_l(x) = relu((x @ w_l) * s_l + t_l),  out = h3 @ w4 + b4."""
    channels, width, height = input_dim
    D = channels * width * height                 # 12288
    H1, H2, H3 = D // 256, D // 512, D // 1024    # 48, 24, 12
    dims = [(D, H1), (H1, H2), (H2, H3), (H3, num_classes)]

    params = {}
    keys = jax.random.split(key, 2 * len(dims))
    for i, (d_in, d_out) in enumerate(dims):
        bound = 1.0 / (d_in ** 0.5)
        w = jax.random.uniform(keys[2 * i], (d_in, d_out),
                               minval=-bound, maxval=bound, dtype=jnp.float32)
        b = jax.random.uniform(keys[2 * i + 1], (d_out,),
                               minval=-bound, maxval=bound, dtype=jnp.float32)
        li = i + 1
        params[f"w{li}"] = w
        if li <= 3:
            # BatchNorm1d at init: gamma=1, beta=0, running_mean=0, running_var=1
            gamma = jnp.ones((d_out,), jnp.float32)
            beta = jnp.zeros((d_out,), jnp.float32)
            rmean = jnp.zeros((d_out,), jnp.float32)
            rvar = jnp.ones((d_out,), jnp.float32)
            scale = gamma / jnp.sqrt(rvar + eps)
            shift = beta + (b - rmean) * scale     # linear bias folded into BN shift
            params[f"s{li}"] = scale.reshape(1, d_out)
            params[f"t{li}"] = shift.reshape(1, d_out)
        else:
            params["b4"] = b.reshape(1, d_out)
    return params


def prepare_kernel_params(params):
    """Fold BN scales into weights (exact), quantize w1 to int8 (per-output-column
    scale, transposed layout), and pack all small operands into one f32 array."""
    # Fold scales BEFORE any quantization cast (quant error applied exactly once).
    w1f = params["w1"] * params["s1"]        # (D, H1)
    w2f = params["w2"] * params["s2"]        # (H1, H2)
    w3f = params["w3"] * params["s3"]        # (H2, H3)
    w4 = params["w4"]                        # (H3, C)
    t1, t2, t3, b4 = params["t1"], params["t2"], params["t3"], params["b4"]

    D, H1 = w1f.shape
    H2 = w2f.shape[1]
    H3 = w3f.shape[1]
    C = w4.shape[1]

    # w1: per-output-column symmetric int8, stored transposed (H1, D) so the
    # dominant HBM->VMEM DMA has dense 12288-byte rows.
    amax = jnp.max(jnp.abs(w1f), axis=0)                       # (H1,)
    qs1 = jnp.maximum(amax / 127.0, 1e-12)                     # dequant scale
    w1q_t = jnp.clip(jnp.round(w1f / qs1), -127.0, 127.0).astype(jnp.int8).T  # (H1, D)

    # Pack w2/w3/w4 and the five small vectors into one f32 array.
    r3 = _round_up(H1, 8)                # row where w3 starts
    r4 = r3 + _round_up(H2, 8)           # row where w4 starts
    rv = r4 + _round_up(H3, 8)           # row where the vectors start
    R = _round_up(rv + 5, 8)
    L = max(H1, H2, H3, C)

    tail = jnp.zeros((R, L), jnp.float32)
    tail = tail.at[0:H1, 0:H2].set(w2f)
    tail = tail.at[r3:r3 + H2, 0:H3].set(w3f)
    tail = tail.at[r4:r4 + H3, 0:C].set(w4)
    tail = tail.at[rv + 0, 0:H1].set(qs1)
    tail = tail.at[rv + 1, 0:H1].set(t1[0])
    tail = tail.at[rv + 2, 0:H2].set(t2[0])
    tail = tail.at[rv + 3, 0:H3].set(t3[0])
    tail = tail.at[rv + 4, 0:C].set(b4[0])

    dims = dict(D=D, H1=H1, H2=H2, H3=H3, C=C, r3=r3, r4=r4, rv=rv)
    return w1q_t, tail, dims


def _mlp_kernel(x_ref, w1q_ref, tail_ref, out_ref, *, dims):
    H1, H2, H3, C = dims["H1"], dims["H2"], dims["H3"], dims["C"]
    r3, r4, rv = dims["r3"], dims["r4"], dims["rv"]

    # block1: int8 w1 dequantized in-register (integers are exact in bf16),
    # bf16 MXU dot (rhs transposed) with f32 accumulation, then per-column
    # dequant scale + folded BN/bias shift + ReLU.  Dropout = identity (eval).
    x_bf = x_ref[...].astype(jnp.bfloat16)
    w1_bf = w1q_ref[...].astype(jnp.bfloat16)
    h1 = jax.lax.dot_general(
        x_bf, w1_bf,
        dimension_numbers=(((1,), (1,)), ((), ())),   # x @ w1_t.T
        preferred_element_type=jnp.float32)
    qs1 = tail_ref[rv + 0:rv + 1, 0:H1]
    t1 = tail_ref[rv + 1:rv + 2, 0:H1]
    h1 = jnp.maximum(h1 * qs1 + t1, 0.0)

    # block2 (BN scale already folded into w2)
    w2 = tail_ref[0:H1, 0:H2]
    t2 = tail_ref[rv + 2:rv + 3, 0:H2]
    h2 = jnp.maximum(jnp.dot(h1, w2, preferred_element_type=jnp.float32) + t2, 0.0)

    # block3
    w3 = tail_ref[r3:r3 + H2, 0:H3]
    t3 = tail_ref[rv + 3:rv + 4, 0:H3]
    h3 = jnp.maximum(jnp.dot(h2, w3, preferred_element_type=jnp.float32) + t3, 0.0)

    # out head: plain Linear
    w4 = tail_ref[r4:r4 + H3, 0:C]
    b4 = tail_ref[rv + 4:rv + 5, 0:C]
    o = jnp.dot(h3, w4, preferred_element_type=jnp.float32) + b4
    out_ref[...] = o.astype(out_ref.dtype)


def mlp_forward(x_flat, w1q_t, tail, dims, *, batch_tile=256):
    """x_flat: (B, D) float32.  Returns (B, C) float32 logits."""
    B, D = x_flat.shape
    assert D == dims["D"]
    H1, H2, H3, C = dims["H1"], dims["H2"], dims["H3"], dims["C"]

    # f32 x tiles: batch tile must be a multiple of 8 sublanes.
    bm = min(_round_up(max(B, 8), 8), _round_up(batch_tile, 8))
    B_pad = _round_up(max(B, bm), bm)

    if B_pad != B:
        x_in = jnp.zeros((B_pad, D), x_flat.dtype).at[:B].set(x_flat)
    else:
        x_in = x_flat

    grid = (B_pad // bm,)

    # VMEM budget (double-buffered blocks + in-kernel bf16 copies), plus margin.
    vmem_bytes = (2 * bm * D * 4                      # x blocks (f32)
                  + bm * D * 2                        # in-kernel bf16 x tile
                  + 2 * _round_up(H1, 32) * D         # w1 int8 blocks (sublane-padded)
                  + _round_up(H1, 16) * D * 2         # in-kernel bf16 w1
                  + 2 * tail.shape[0] * 128 * 4       # tail blocks (lane-padded)
                  + 2 * bm * 128 * 4)                 # out blocks (lane-padded)
    vmem_limit = int(min(vmem_bytes + (16 << 20), 100 << 20))

    flops = 2 * B_pad * (D * H1 + H1 * H2 + H2 * H3 + H3 * C)
    bytes_accessed = int(x_in.size * 4 + w1q_t.size * 1 + tail.size * 4
                         + B_pad * C * 4)

    kernel = functools.partial(_mlp_kernel, dims=dims)

    out = pl.pallas_call(
        kernel,
        out_shape=jax.ShapeDtypeStruct((B_pad, C), jnp.float32),
        grid_spec=pltpu.PrefetchScalarGridSpec(
            num_scalar_prefetch=0,
            grid=grid,
            in_specs=[
                pl.BlockSpec((bm, D), lambda i: (i, 0)),       # x tile (f32)
                pl.BlockSpec(w1q_t.shape, lambda i: (0, 0)),   # w1 int8, (H1, D)
                pl.BlockSpec(tail.shape, lambda i: (0, 0)),    # packed small operands
            ],
            out_specs=pl.BlockSpec((bm, C), lambda i: (i, 0)),
        ),
        compiler_params=pltpu.CompilerParams(
            dimension_semantics=("parallel",),
            vmem_limit_bytes=vmem_limit),
        cost_estimate=pl.CostEstimate(flops=flops, transcendentals=0,
                                      bytes_accessed=bytes_accessed),
    )(x_in, w1q_t, tail)

    return out[:B]


def reference_forward_f32(x_flat, p):
    """Pure-JAX full-f32 reference of the eval-mode PyTorch forward."""
    hp = jax.lax.Precision.HIGHEST
    h1 = jnp.maximum(jnp.dot(x_flat, p["w1"], precision=hp) * p["s1"] + p["t1"], 0.0)
    h2 = jnp.maximum(jnp.dot(h1, p["w2"], precision=hp) * p["s2"] + p["t2"], 0.0)
    h3 = jnp.maximum(jnp.dot(h2, p["w3"], precision=hp) * p["s3"] + p["t3"], 0.0)
    return jnp.dot(h3, p["w4"], precision=hp) + p["b4"]


def reference_forward_matched(x_flat, w1q_t, tail, dims):
    """Pure-JAX reference matching the kernel's streaming dtypes
    (bf16 activations into block1, int8-dequantized / BN-folded w1)."""
    hp = jax.lax.Precision.HIGHEST
    H1, H2, H3, C = dims["H1"], dims["H2"], dims["H3"], dims["C"]
    r3, r4, rv = dims["r3"], dims["r4"], dims["rv"]

    qs1 = tail[rv, 0:H1]
    w1_eff = w1q_t.astype(jnp.float32).T * qs1[None, :]          # (D, H1)
    xb = x_flat.astype(jnp.bfloat16).astype(jnp.float32)

    h1 = jnp.maximum(jnp.dot(xb, w1_eff, precision=hp) + tail[rv + 1, 0:H1], 0.0)
    h2 = jnp.maximum(jnp.dot(h1, tail[0:H1, 0:H2], precision=hp) + tail[rv + 2, 0:H2], 0.0)
    h3 = jnp.maximum(jnp.dot(h2, tail[r3:r3 + H2, 0:H3], precision=hp) + tail[rv + 3, 0:H3], 0.0)
    return jnp.dot(h3, tail[r4:r4 + H3, 0:C], precision=hp) + tail[rv + 4, 0:C]


if __name__ == "__main__":
    key = jax.random.PRNGKey(0)
    k_param, k_x = jax.random.split(key)

    B = 2
    input_dim = (3, 64, 64)
    num_classes = 3
    x = jax.random.normal(k_x, (B,) + input_dim, dtype=jnp.float32)  # NCHW

    params = init_params(k_param, input_dim=input_dim, num_classes=num_classes)
    w1q_t, tail, dims = prepare_kernel_params(params)

    # nn.Flatten equivalent (plain JAX glue)
    x_flat = x.reshape(B, -1)

    out = mlp_forward(x_flat, w1q_t, tail, dims)
    out = jax.block_until_ready(out)
    assert out.shape == (B, num_classes)

    # Tight check against a reference using the kernel's own streaming dtypes.
    ref_matched = reference_forward_matched(x_flat, w1q_t, tail, dims)
    assert jnp.allclose(out, ref_matched, atol=2e-3, rtol=2e-3), "mismatch vs matched reference"

    # Loose semantic sanity check against the unquantized full-f32 reference.
    ref_f32 = reference_forward_f32(x_flat, params)
    assert jnp.allclose(out, ref_f32, atol=1e-1, rtol=1e-1), "mismatch vs f32 reference"

    print("KERNEL_OK")
</pallas_src>

<mosaic_0001>
module attributes {stable_mosaic.version = 11 : i64} {
  func.func @_mlp_kernel(%arg0: i32, %arg1: memref<8x12288xf32, #tpu.memory_space<vmem>>, %arg2: memref<48x12288xi8, #tpu.memory_space<vmem>>, %arg3: memref<96x48xf32, #tpu.memory_space<vmem>>, %arg4: memref<8x3xf32, #tpu.memory_space<vmem>>) attributes {dimension_semantics = [#tpu.dimension_semantics<parallel>], iteration_bounds = array<i64: 1>, scalar_prefetch = 0 : i64, scratch_operands = 0 : i64, tpu.core_type = #tpu.core_type<tc>, window_params = [{transform_indices = @transform_0, window_bounds = array<i64: 8, 12288>}, {pipeline_mode = #tpu.pipeline_mode<synchronous>, transform_indices = @transform_1, window_bounds = array<i64: 48, 12288>}, {pipeline_mode = #tpu.pipeline_mode<synchronous>, transform_indices = @transform_2, window_bounds = array<i64: 96, 48>}, {transform_indices = @transform_3, window_bounds = array<i64: 8, 3>}]} {
    %c0 = arith.constant 0 : index
    %c0_0 = arith.constant 0 : index
    %0 = vector.load %arg1[%c0, %c0_0] : memref<8x12288xf32, #tpu.memory_space<vmem>>, vector<8x12288xf32>
    %1 = arith.truncf %0 : vector<8x12288xf32> to vector<8x12288xbf16>
    %c0_1 = arith.constant 0 : index
    %c0_2 = arith.constant 0 : index
    %2 = vector.load %arg2[%c0_1, %c0_2] : memref<48x12288xi8, #tpu.memory_space<vmem>>, vector<48x12288xi8>
    %3 = arith.sitofp %2 : vector<48x12288xi8> to vector<48x12288xbf16>
    %cst = arith.constant dense<0.000000e+00> : vector<8x48xf32>
    %4 = tpu.matmul %1, %3, %cst {dimension_numbers = #tpu.dot_dimension_numbers<[1], [1], [0], [0], [0, 0, 1, 0], [], []>} : vector<8x12288xbf16>, vector<48x12288xbf16>, vector<8x48xf32> -> vector<8x48xf32>
    %c88 = arith.constant 88 : index
    %c0_3 = arith.constant 0 : index
    %5 = vector.load %arg3[%c88, %c0_3] : memref<96x48xf32, #tpu.memory_space<vmem>>, vector<1x48xf32>
    %c89 = arith.constant 89 : index
    %c0_4 = arith.constant 0 : index
    %6 = vector.load %arg3[%c89, %c0_4] : memref<96x48xf32, #tpu.memory_space<vmem>>, vector<1x48xf32>
    %7 = vector.broadcast %5 : vector<1x48xf32> to vector<8x48xf32>
    %8 = arith.mulf %4, %7 : vector<8x48xf32>
    %9 = vector.broadcast %6 : vector<1x48xf32> to vector<8x48xf32>
    %10 = arith.addf %8, %9 : vector<8x48xf32>
    %cst_5 = arith.constant 0.000000e+00 : f32
    %11 = vector.broadcast %cst_5 : f32 to vector<8x48xf32>
    %12 = arith.maximumf %10, %11 : vector<8x48xf32>
    %c0_6 = arith.constant 0 : index
    %c0_7 = arith.constant 0 : index
    %13 = vector.load %arg3[%c0_6, %c0_7] : memref<96x48xf32, #tpu.memory_space<vmem>>, vector<48x24xf32>
    %c90 = arith.constant 90 : index
    %c0_8 = arith.constant 0 : index
    %14 = vector.load %arg3[%c90, %c0_8] : memref<96x48xf32, #tpu.memory_space<vmem>>, vector<1x24xf32>
    %cst_9 = arith.constant dense<0.000000e+00> : vector<8x24xf32>
    %15 = tpu.matmul %12, %13, %cst_9 {dimension_numbers = #tpu.dot_dimension_numbers<[1], [0], [0], [1], [0, 0, 1, 1], [], []>} : vector<8x48xf32>, vector<48x24xf32>, vector<8x24xf32> -> vector<8x24xf32>
    %16 = vector.broadcast %14 : vector<1x24xf32> to vector<8x24xf32>
    %17 = arith.addf %15, %16 : vector<8x24xf32>
    %cst_10 = arith.constant 0.000000e+00 : f32
    %18 = vector.broadcast %cst_10 : f32 to vector<8x24xf32>
    %19 = arith.maximumf %17, %18 : vector<8x24xf32>
    %c48 = arith.constant 48 : index
    %c0_11 = arith.constant 0 : index
    %20 = vector.load %arg3[%c48, %c0_11] : memref<96x48xf32, #tpu.memory_space<vmem>>, vector<24x12xf32>
    %c91 = arith.constant 91 : index
    %c0_12 = arith.constant 0 : index
    %21 = vector.load %arg3[%c91, %c0_12] : memref<96x48xf32, #tpu.memory_space<vmem>>, vector<1x12xf32>
    %cst_13 = arith.constant dense<0.000000e+00> : vector<8x12xf32>
    %22 = tpu.matmul %19, %20, %cst_13 {dimension_numbers = #tpu.dot_dimension_numbers<[1], [0], [0], [1], [0, 0, 1, 1], [], []>} : vector<8x24xf32>, vector<24x12xf32>, vector<8x12xf32> -> vector<8x12xf32>
    %23 = vector.broadcast %21 : vector<1x12xf32> to vector<8x12xf32>
    %24 = arith.addf %22, %23 : vector<8x12xf32>
    %cst_14 = arith.constant 0.000000e+00 : f32
    %25 = vector.broadcast %cst_14 : f32 to vector<8x12xf32>
    %26 = arith.maximumf %24, %25 : vector<8x12xf32>
    %c72 = arith.constant 72 : index
    %c0_15 = arith.constant 0 : index
    %27 = vector.load %arg3[%c72, %c0_15] : memref<96x48xf32, #tpu.memory_space<vmem>>, vector<12x3xf32>
    %c92 = arith.constant 92 : index
    %c0_16 = arith.constant 0 : index
    %28 = vector.load %arg3[%c92, %c0_16] : memref<96x48xf32, #tpu.memory_space<vmem>>, vector<1x3xf32>
    %cst_17 = arith.constant dense<0.000000e+00> : vector<8x3xf32>
    %29 = tpu.matmul %26, %27, %cst_17 {dimension_numbers = #tpu.dot_dimension_numbers<[1], [0], [0], [1], [0, 0, 1, 1], [], []>} : vector<8x12xf32>, vector<12x3xf32>, vector<8x3xf32> -> vector<8x3xf32>
    %30 = vector.broadcast %28 : vector<1x3xf32> to vector<8x3xf32>
    %31 = arith.addf %29, %30 : vector<8x3xf32>
    %c0_18 = arith.constant 0 : index
    %c0_19 = arith.constant 0 : index
    %32 = vector.load %arg4[%c0_18, %c0_19] : memref<8x3xf32, #tpu.memory_space<vmem>>, vector<8x3xf32>
    tpu.vector_store %arg4[%c0_18, %c0_19], %31 {strides = array<i32>} : memref<8x3xf32, #tpu.memory_space<vmem>>, vector<8x3xf32>,
    return
  }
  func.func @transform_0(%arg0: i32) -> (i32, i32) {
    %c0_i32 = arith.constant 0 : i32
    %c0_i32_0 = arith.constant 0 : i32
    return %arg0, %c0_i32 : i32, i32
  }
  func.func @transform_1(%arg0: i32) -> (i32, i32) {
    %c0_i32 = arith.constant 0 : i32
    %c0_i32_0 = arith.constant 0 : i32
    %c0_i32_1 = arith.constant 0 : i32
    return %c0_i32, %c0_i32_0 : i32, i32
  }
  func.func @transform_2(%arg0: i32) -> (i32, i32) {
    %c0_i32 = arith.constant 0 : i32
    %c0_i32_0 = arith.constant 0 : i32
    %c0_i32_1 = arith.constant 0 : i32
    return %c0_i32, %c0_i32_0 : i32, i32
  }
  func.func @transform_3(%arg0: i32) -> (i32, i32) {
    %c0_i32 = arith.constant 0 : i32
    %c0_i32_0 = arith.constant 0 : i32
    return %arg0, %c0_i32 : i32, i32
  }
}

</mosaic_0001>

<bundles_post_ra>
// kernel: tpu_custom_call.1
= control target key start
LH: loop header
LB: loop body
LE: loop exit
PB: predicated region body
PF: predicated region fallthrough
CT: control target
= control target key end

     0   :  { %8 = vsyncpa [#allocation3], 0  ;;  %s4795_s0 = inlined_call_operand.hbm [shape: f32[8,12288], index: 0, kind: input, shape index: {}]   ;;  %s4796_s1 = inlined_call_operand.hbm [shape: s8[48,12288], index: 1, kind: input, shape index: {}]   ;;  %s4797_s2 = inlined_call_operand.vmem [shape: f32[96,48], index: 2, kind: input, shape index: {}]   ;;  %s4798_s3 = inlined_call_operand.vmem [shape: f32[8,3], index: 3, kind: output, shape index: {}]  }
   0x1   :  { %9 = vsyncpa [#allocation5], 0  ;;  %s4692_s12 = smov [#allocation2]   ;;  %s4693_s14 = smov [#allocation4]  }
   0x2   :  { %s16_s13 = sshll.u32 %s4692_s12, 4  ;;  %s25_s15 = sshll.u32 %s4693_s14, 4  ;;  %s17_s13 = int_to_ptr.vmem [resolvable:$true] %s16_s13  ;;  %s26_s15 = int_to_ptr.vmem [resolvable:$true] %s25_s15 }
   0x3   :  { %s4656_s16 = scalar_lea.vmem %s17_s13, 12288  ;;  %p4661_p1 = scmp.lt.s32.totalorder %s17_s13, %s17_s13 }
   0x4   :  { %p4657_p0 = scmp.ne.s32.totalorder %s17_s13, %s4656_s16  ;;  %p4662_p2 = scmp.lt.s32.totalorder %s4656_s16, %s4656_s16 }
   0x6   :  { %p4663_p3 = por %p4662_p2, %p4661_p1 }
   0x8   :  { %p4664_p4 = pnand %p4663_p3, %p4657_p0 }
   0xa   :  { %4667 = shalt.err (!%p4664_p4)
}
   0xb   :  { %19 = dma.hbm_to_vmem [thread:$0]  %s4795_s0, 12288, %s17_s13, [#allocation3]  }
   0xc   :  { %s4676_s19 = scalar_lea.vmem %s26_s15, 18432  ;;  %p4681_p6 = scmp.lt.s32.totalorder %s26_s15, %s26_s15 }
   0xd   :  { %p4677_p5 = scmp.ne.s32.totalorder %s26_s15, %s4676_s19  ;;  %p4682_p7 = scmp.lt.s32.totalorder %s4676_s19, %s4676_s19 }
   0xf   :  { %p4683_p8 = por %p4682_p7, %p4681_p6 }
  0x11   :  { %p4684_p9 = pnand %p4683_p8, %p4677_p5 }
  0x13   :  { %4687 = shalt.err (!%p4684_p9)
}
  0x14   :  { %s4694_s20 = smov 3072   ;;  %s4695_s21 = smov 192  }
  0x15   :  { %31 = dma.hbm_to_vmem [thread:$0]  %s4796_s1, 18432, %s26_s15, [#allocation5], %s4694_s20, %s4694_s20, %s4695_s21  }
  0x16   :  { %4688 = dma.done.wait [#allocation3], 12288  }
  0x17   :  { %4689 = vsyncadd [#allocation3], 4294955008 }
  0x18   :  { %4690 = dma.done.wait [#allocation5], 18432  }
  0x19   :  { %4691 = vsyncadd [#allocation5], 4294948864  ;;  %v329_v0 = vld [vmem:[#allocation4 + $0x300] sm:$0xff]  ;;  %v42_v16 = vld [vmem:[#allocation2 + $0x8] sm:$0xff]  ;;  %vm4697_vm0 = vmmov 0   ;;  %vm4049_vm1 = vcmask 392192  }
  0x1a   :  { %v353_v1 = vld [vmem:[#allocation4 + $0x3c0] sm:$0xff]  ;;  %v569_v3 = vunpack.c.l.s8.bf16 %v329_v0  ;;  %v570_v5 = vunpack.c.h.s8.bf16 %v329_v0  ;;  %v44_v17 = vld [vmem:[#allocation2 + $0x18] sm:$0xff]  ;;  %v138_v22 = vpack.c.bf16 %v42_v16, %v42_v16  ;;  %v330_v32 = vld [vmem:[#allocation4 + $0x308] sm:$0xff]  ;;  %vm4132_vm2 = vcmask 195584  }
  0x1b   :  { %v281_v2 = vld [vmem:[#allocation4 + $0x180] sm:$0xff]  ;;  %v617_v4 = vunpack.c.l.s8.bf16 %v353_v1  ;;  %v618_v6 = vunpack.c.h.s8.bf16 %v353_v1  ;;  %v140_v23 = vpack.c.bf16 %v44_v17, %v44_v17  ;;  %v354_v33 = vld [vmem:[#allocation4 + $0x3c8] sm:$0xff]  ;;  %v571_v34 = vunpack.c.l.s8.bf16 %v330_v32  ;;  %v43_v45 = vld [vmem:[#allocation2 + $0x10] sm:$0xff] }
  0x1c   :  { %v305_v7 = vld [vmem:[#allocation4 + $0x240] sm:$0xff]  ;;  %v473_v8 = vunpack.c.l.s8.bf16 %v281_v2  ;;  %v474_v10 = vunpack.c.h.s8.bf16 %v281_v2  ;;  %2137 = vmatprep.mubr.bf16.mxu0 %v138_v22  ;;  %v619_v35 = vunpack.c.l.s8.bf16 %v354_v33  ;;  %v572_v36 = vunpack.c.h.s8.bf16 %v330_v32  ;;  %v282_v42 = vld [vmem:[#allocation4 + $0x188] sm:$0xff]  ;;  %v48_v53 = vld [vmem:[#allocation2 + $0x38] sm:$0xff] }
  0x1d   :  { %v521_v9 = vunpack.c.l.s8.bf16 %v305_v7  ;;  %v522_v11 = vunpack.c.h.s8.bf16 %v305_v7  ;;  %v4493_v12 = vcombine.high %v569_v3, %v617_v4  ;;  %v4495_v13 = vcombine.high %v570_v5, %v618_v6  ;;  %v233_v20 = vld [vmem:[#allocation4] sm:$0xff]  ;;  %2177 = vmatprep.mubr.bf16.mxu1 %v140_v23  ;;  %v306_v43 = vld [vmem:[#allocation4 + $0x248] sm:$0xff]  ;;  %v355_v7 = vld [vmem:[#allocation4 + $0x3d0] sm:$0xff] }
  0x1e   :  { %v4492_v14 = vcombine.low %v569_v3, %v617_v4  ;;  %v4494_v15 = vcombine.low %v570_v5, %v618_v6  ;;  %v257_v21 = vld [vmem:[#allocation4 + $0xc0] sm:$0xff]  ;;  %v377_v24 = vunpack.c.l.s8.bf16 %v233_v20  ;;  %v378_v26 = vunpack.c.h.s8.bf16 %v233_v20  ;;  %v46_v52 = vld [vmem:[#allocation2 + $0x28] sm:$0xff]  ;;  %v331_v6 = vld [vmem:[#allocation4 + $0x310] sm:$0xff] }
  0x1f   :  { %v4397_v18 = vcombine.high %v473_v8, %v521_v9  ;;  %v4399_v19 = vcombine.high %v474_v10, %v522_v11  ;;  %2115 = vmatprep.subr.bf16.mxu0 %v4493_v12  ;;  %2155 = vmatprep.subr.bf16.mxu1 %v4495_v13  ;;  %v425_v25 = vunpack.c.l.s8.bf16 %v257_v21  ;;  %v426_v27 = vunpack.c.h.s8.bf16 %v257_v21  ;;  %v41_v44 = vld [vmem:[#allocation2] sm:$0xff]  ;;  %v234_v58 = vld [vmem:[#allocation4 + $0x8] sm:$0xff]  ;;  %v283_v16 = vld [vmem:[#allocation4 + $0x190] sm:$0xff] }
  0x20   :  { %2116 = vmatpush1.bf16.xpose.msra.mxu0 %v4492_v14  ;;  %2156 = vmatpush1.bf16.xpose.msra.mxu1 %v4494_v15  ;;  %v4396_v28 = vcombine.low %v473_v8, %v521_v9  ;;  %v4398_v29 = vcombine.low %v474_v10, %v522_v11  ;;  %v620_v37 = vunpack.c.h.s8.bf16 %v354_v33  ;;  %v4497_v40 = vcombine.high %v571_v34, %v619_v35  ;;  %v258_v59 = vld [vmem:[#allocation4 + $0xc8] sm:$0xff]  ;;  %v307_v17 = vld [vmem:[#allocation4 + $0x250] sm:$0xff] }
  0x21   :  { %2117 = vmatprep.subr.bf16.mxu0 %v4397_v18  ;;  %2157 = vmatprep.subr.bf16.mxu1 %v4399_v19  ;;  %v4301_v30 = vcombine.high %v377_v24, %v425_v25  ;;  %v4303_v31 = vcombine.high %v378_v26, %v426_v27  ;;  %v4300_v38 = vcombine.low %v377_v24, %v425_v25  ;;  %v475_v46 = vunpack.c.l.s8.bf16 %v282_v42  ;;  %v45_v18 = vld [vmem:[#allocation2 + $0x20] sm:$0xff]  ;;  %v47_v19 = vld [vmem:[#allocation2 + $0x30] sm:$0xff] }
  0x22   :  { %v4302_v39 = vcombine.low %v378_v26, %v426_v27  ;;  %v4499_v41 = vcombine.high %v572_v36, %v620_v37  ;;  %v523_v47 = vunpack.c.l.s8.bf16 %v306_v43  ;;  %v476_v48 = vunpack.c.h.s8.bf16 %v282_v42  ;;  %v50_v26 = vld [vmem:[#allocation2 + $0x48] sm:$0xff]  ;;  %v52_v27 = vld [vmem:[#allocation2 + $0x58] sm:$0xff]  ;;  %v235_v32 = vld [vmem:[#allocation4 + $0x10] sm:$0xff] }
  0x23   :  { %v524_v49 = vunpack.c.h.s8.bf16 %v306_v43  ;;  %v137_v50 = vpack.c.bf16 %v41_v44, %v41_v44  ;;  %v139_v51 = vpack.c.bf16 %v43_v45, %v43_v45  ;;  %v4496_v54 = vcombine.low %v571_v34, %v619_v35  ;;  %v259_v33 = vld [vmem:[#allocation4 + $0xd0] sm:$0xff]  ;;  %v332_v44 = vld [vmem:[#allocation4 + $0x318] sm:$0xff] }
  0x24   :  { %v4498_v55 = vcombine.low %v572_v36, %v620_v37  ;;  %v4401_v56 = vcombine.high %v475_v46, %v523_v47  ;;  %v142_v60 = vpack.c.bf16 %v46_v52, %v46_v52  ;;  %v144_v61 = vpack.c.bf16 %v48_v53, %v48_v53  ;;  %v356_v45 = vld [vmem:[#allocation4 + $0x3d8] sm:$0xff] }
  0x25   :  { %v4403_v57 = vcombine.high %v476_v48, %v524_v49  ;;  %v379_v62 = vunpack.c.l.s8.bf16 %v234_v58  ;;  %v427_v63 = vunpack.c.l.s8.bf16 %v258_v59  ;;  %v380_v0 = vunpack.c.h.s8.bf16 %v234_v58 }
  0x26   :  { %v428_v1 = vunpack.c.h.s8.bf16 %v258_v59  ;;  %v4400_v2 = vcombine.low %v475_v46, %v523_v47  ;;  %v4402_v3 = vcombine.low %v476_v48, %v524_v49  ;;  %v573_v8 = vunpack.c.l.s8.bf16 %v331_v6 }
  0x27   :  { %v4305_v4 = vcombine.high %v379_v62, %v427_v63  ;;  %v621_v9 = vunpack.c.l.s8.bf16 %v355_v7  ;;  %v574_v10 = vunpack.c.h.s8.bf16 %v331_v6  ;;  %v622_v11 = vunpack.c.h.s8.bf16 %v355_v7  ;;  %v236_v6 = vld [vmem:[#allocation4 + $0x18] sm:$0xff] }
  0x28   :  { %2118 = vmatpush1.bf16.xpose.msra.mxu0 %v4396_v28  ;;  %2158 = vmatpush1.bf16.xpose.msra.mxu1 %v4398_v29  ;;  %v4307_v5 = vcombine.high %v380_v0, %v428_v1  ;;  %v4304_v12 = vcombine.low %v379_v62, %v427_v63  ;;  %v4306_v13 = vcombine.low %v380_v0, %v428_v1  ;;  %v477_v20 = vunpack.c.l.s8.bf16 %v283_v16  ;;  %v54_v0 = vld [vmem:[#allocation2 + $0x68] sm:$0xff]  ;;  %v56_v1 = vld [vmem:[#allocation2 + $0x78] sm:$0xff] }
  0x29   :  { %2119 = vmatprep.subr.bf16.mxu0 %v4301_v30  ;;  %2159 = vmatprep.subr.bf16.mxu1 %v4303_v31  ;;  %v4501_v14 = vcombine.high %v573_v8, %v621_v9  ;;  %v4503_v15 = vcombine.high %v574_v10, %v622_v11  ;;  %v525_v21 = vunpack.c.l.s8.bf16 %v307_v17  ;;  %v478_v22 = vunpack.c.h.s8.bf16 %v283_v16  ;;  %v260_v7 = vld [vmem:[#allocation4 + $0xd8] sm:$0xff] }
  0x2a   :  { %v526_v23 = vunpack.c.h.s8.bf16 %v307_v17  ;;  %v141_v24 = vpack.c.bf16 %v45_v18, %v45_v18  ;;  %v143_v25 = vpack.c.bf16 %v47_v19, %v47_v19  ;;  %v4500_v28 = vcombine.low %v573_v8, %v621_v9  ;;  %v333_v18 = vld [vmem:[#allocation4 + $0x320] sm:$0xff] }
  0x2b   :  { %v4502_v29 = vcombine.low %v574_v10, %v622_v11  ;;  %v4405_v30 = vcombine.high %v477_v20, %v525_v21  ;;  %v146_v34 = vpack.c.bf16 %v50_v26, %v50_v26  ;;  %v148_v35 = vpack.c.bf16 %v52_v27, %v52_v27  ;;  %v357_v19 = vld [vmem:[#allocation4 + $0x3e0] sm:$0xff] }
  0x2c   :  { %v4407_v31 = vcombine.high %v478_v22, %v526_v23  ;;  %v381_v36 = vunpack.c.l.s8.bf16 %v235_v32  ;;  %v429_v37 = vunpack.c.l.s8.bf16 %v259_v33  ;;  %v575_v46 = vunpack.c.l.s8.bf16 %v332_v44 }
  0x2d   :  { %v623_v47 = vunpack.c.l.s8.bf16 %v356_v45  ;;  %v576_v48 = vunpack.c.h.s8.bf16 %v332_v44  ;;  %v624_v49 = vunpack.c.h.s8.bf16 %v356_v45  ;;  %v150_v8 = vpack.c.bf16 %v54_v0, %v54_v0  ;;  %v237_v44 = vld [vmem:[#allocation4 + $0x20] sm:$0xff] }
  0x2e   :  { %v4309_v42 = vcombine.high %v381_v36, %v429_v37  ;;  %v152_v9 = vpack.c.bf16 %v56_v1, %v56_v1  ;;  %v383_v10 = vunpack.c.l.s8.bf16 %v236_v6  ;;  %v431_v11 = vunpack.c.l.s8.bf16 %v260_v7  ;;  %v261_v45 = vld [vmem:[#allocation4 + $0xe0] sm:$0xff] }
  0x2f   :  { %v4505_v52 = vcombine.high %v575_v46, %v623_v47  ;;  %v4507_v53 = vcombine.high %v576_v48, %v624_v49  ;;  %vm4218_vm3 = vcmask 1043456   ;;  %vm4214_vm4 = vcmask 97280  }
  0x30   :  { %2120 = vmatpush1.bf16.xpose.msra.mxu0 %v4300_v38  ;;  %2160 = vmatpush1.bf16.xpose.msra.mxu1 %v4302_v39  ;;  %v382_v38 = vunpack.c.h.s8.bf16 %v235_v32  ;;  %v430_v39 = vunpack.c.h.s8.bf16 %v259_v33  ;;  %v4313_v16 = vcombine.high %v383_v10, %v431_v11  ;;  %vm4292_vm5 = vcmask 23552  }
  0x31   :  { %2195 = vmatprep.subr.bf16.mxu0 %v4497_v40  ;;  %2235 = vmatprep.subr.bf16.mxu1 %v4499_v41  ;;  %v4404_v40 = vcombine.low %v477_v20, %v525_v21  ;;  %v4406_v41 = vcombine.low %v478_v22, %v526_v23  ;;  %v577_v20 = vunpack.c.l.s8.bf16 %v333_v18  ;;  %v625_v21 = vunpack.c.l.s8.bf16 %v357_v19 }
  0x32   :  { %v4311_v43 = vcombine.high %v382_v38, %v430_v39  ;;  %v578_v22 = vunpack.c.h.s8.bf16 %v333_v18  ;;  %v626_v23 = vunpack.c.h.s8.bf16 %v357_v19  ;;  %v238_v18 = vld [vmem:[#allocation4 + $0x28] sm:$0xff] }
  0x33   :  { %v4509_v26 = vcombine.high %v577_v20, %v625_v21  ;;  %v262_v19 = vld [vmem:[#allocation4 + $0xe8] sm:$0xff] }
  0x34   :  { %v4511_v27 = vcombine.high %v578_v22, %v626_v23 }
  0x37   :  { %2138 = vmatmul.mubr.bf16.vlgmr.msra.gmra.mxu0 %v137_v50  ;;  %2178 = vmatmul.mubr.bf16.vlgmr.msra.gmra.mxu1 %v139_v51  ;;  %v4308_v50 = vcombine.low %v381_v36, %v429_v37  ;;  %v4310_v51 = vcombine.low %v382_v38, %v430_v39  ;;  %v58_v38 = vld [vmem:[#allocation2 + $0x88] sm:$0xff]  ;;  %v60_v39 = vld [vmem:[#allocation2 + $0x98] sm:$0xff] }
  0x38   :  { %2196 = vmatpush1.bf16.xpose.msra.mxu0 %v4496_v54  ;;  %2236 = vmatpush1.bf16.xpose.msra.mxu1 %v4498_v55  ;;  %v284_v54 = vld [vmem:[#allocation4 + $0x198] sm:$0xff] }
  0x39   :  { %2197 = vmatprep.subr.bf16.mxu0 %v4401_v56  ;;  %2237 = vmatprep.subr.bf16.mxu1 %v4403_v57  ;;  %v308_v55 = vld [vmem:[#allocation4 + $0x258] sm:$0xff]  ;;  %v49_v56 = vld [vmem:[#allocation2 + $0x40] sm:$0xff]  ;;  %v51_v57 = vld [vmem:[#allocation2 + $0x50] sm:$0xff]  ;;  %v479_v58 = vunpack.c.l.s8.bf16 %v284_v54 }
  0x3a   :  { %2217 = vmatprep.mubr.bf16.mxu0 %v142_v60  ;;  %2257 = vmatprep.mubr.bf16.mxu1 %v144_v61  ;;  %v527_v59 = vunpack.c.l.s8.bf16 %v308_v55  ;;  %v480_v60 = vunpack.c.h.s8.bf16 %v284_v54  ;;  %v528_v61 = vunpack.c.h.s8.bf16 %v308_v55  ;;  %v145_v62 = vpack.c.bf16 %v49_v56, %v49_v56  ;;  %v334_v56 = vld [vmem:[#allocation4 + $0x328] sm:$0xff] }
  0x3b   :  { %v147_v63 = vpack.c.bf16 %v51_v57, %v51_v57  ;;  %v358_v57 = vld [vmem:[#allocation4 + $0x3e8] sm:$0xff] }
  0x40   :  { %2198 = vmatpush1.bf16.xpose.msra.mxu0 %v4400_v2  ;;  %2238 = vmatpush1.bf16.xpose.msra.mxu1 %v4402_v3  ;;  %v4504_v2 = vcombine.low %v575_v46, %v623_v47  ;;  %v4506_v3 = vcombine.low %v576_v48, %v624_v49  ;;  %v154_v46 = vpack.c.bf16 %v58_v38, %v58_v38  ;;  %v385_v48 = vunpack.c.l.s8.bf16 %v237_v44 }
  0x41   :  { %2199 = vmatprep.subr.bf16.mxu0 %v4305_v4  ;;  %2239 = vmatprep.subr.bf16.mxu1 %v4307_v5  ;;  %v4409_v4 = vcombine.high %v479_v58, %v527_v59  ;;  %v4411_v5 = vcombine.high %v480_v60, %v528_v61  ;;  %v156_v47 = vpack.c.bf16 %v60_v39, %v60_v39  ;;  %v433_v49 = vunpack.c.l.s8.bf16 %v261_v45 }
  0x43   :  { %v4317_v54 = vcombine.high %v385_v48, %v433_v49 }
  0x48   :  { %2200 = vmatpush1.bf16.xpose.msra.mxu0 %v4304_v12  ;;  %2240 = vmatpush1.bf16.xpose.msra.mxu1 %v4306_v13  ;;  %v384_v12 = vunpack.c.h.s8.bf16 %v236_v6  ;;  %v432_v13 = vunpack.c.h.s8.bf16 %v260_v7 }
  0x49   :  { %2275 = vmatprep.subr.bf16.mxu0 %v4501_v14  ;;  %2315 = vmatprep.subr.bf16.mxu1 %v4503_v15  ;;  %v4408_v14 = vcombine.low %v479_v58, %v527_v59  ;;  %v4410_v15 = vcombine.low %v480_v60, %v528_v61  ;;  %v579_v58 = vunpack.c.l.s8.bf16 %v334_v56  ;;  %v627_v59 = vunpack.c.l.s8.bf16 %v358_v57 }
  0x4a   :  { %v4315_v17 = vcombine.high %v384_v12, %v432_v13  ;;  %v580_v60 = vunpack.c.h.s8.bf16 %v334_v56  ;;  %v628_v61 = vunpack.c.h.s8.bf16 %v358_v57  ;;  %v239_v56 = vld [vmem:[#allocation4 + $0x30] sm:$0xff] }
  0x4b   :  { %v4513_v0 = vcombine.high %v579_v58, %v627_v59  ;;  %v263_v57 = vld [vmem:[#allocation4 + $0xf0] sm:$0xff] }
  0x4c   :  { %v4515_v1 = vcombine.high %v580_v60, %v628_v61 }
  0x4f   :  { %2218 = vmatmul.mubr.bf16.vlgmr.msra.gmra.mxu0 %v141_v24  ;;  %2258 = vmatmul.mubr.bf16.vlgmr.msra.gmra.mxu1 %v143_v25  ;;  %v4312_v24 = vcombine.low %v383_v10, %v431_v11  ;;  %v4314_v25 = vcombine.low %v384_v12, %v432_v13  ;;  %v62_v12 = vld [vmem:[#allocation2 + $0xa8] sm:$0xff]  ;;  %v64_v13 = vld [vmem:[#allocation2 + $0xb8] sm:$0xff] }
  0x50   :  { %2276 = vmatpush1.bf16.xpose.msra.mxu0 %v4500_v28  ;;  %2316 = vmatpush1.bf16.xpose.msra.mxu1 %v4502_v29  ;;  %v285_v28 = vld [vmem:[#allocation4 + $0x1a0] sm:$0xff] }
  0x51   :  { %2277 = vmatprep.subr.bf16.mxu0 %v4405_v30  ;;  %2317 = vmatprep.subr.bf16.mxu1 %v4407_v31  ;;  %v309_v29 = vld [vmem:[#allocation4 + $0x260] sm:$0xff]  ;;  %v55_v31 = vld [vmem:[#allocation2 + $0x70] sm:$0xff]  ;;  %v481_v32 = vunpack.c.l.s8.bf16 %v285_v28 }
  0x52   :  { %2297 = vmatprep.mubr.bf16.mxu0 %v146_v34  ;;  %2337 = vmatprep.mubr.bf16.mxu1 %v148_v35  ;;  %v53_v30 = vld [vmem:[#allocation2 + $0x60] sm:$0xff]  ;;  %v529_v33 = vunpack.c.l.s8.bf16 %v309_v29  ;;  %v482_v34 = vunpack.c.h.s8.bf16 %v285_v28  ;;  %v530_v35 = vunpack.c.h.s8.bf16 %v309_v29  ;;  %v151_v37 = vpack.c.bf16 %v55_v31, %v55_v31  ;;  %v359_v31 = vld [vmem:[#allocation4 + $0x3f0] sm:$0xff] }
  0x53   :  { %v149_v36 = vpack.c.bf16 %v53_v30, %v53_v30  ;;  %v335_v30 = vld [vmem:[#allocation4 + $0x330] sm:$0xff] }
  0x58   :  { %2278 = vmatpush1.bf16.xpose.msra.mxu0 %v4404_v40  ;;  %2318 = vmatpush1.bf16.xpose.msra.mxu1 %v4406_v41  ;;  %v4508_v40 = vcombine.low %v577_v20, %v625_v21  ;;  %v4510_v41 = vcombine.low %v578_v22, %v626_v23  ;;  %v158_v20 = vpack.c.bf16 %v62_v12, %v62_v12  ;;  %v387_v22 = vunpack.c.l.s8.bf16 %v238_v18 }
  0x59   :  { %2279 = vmatprep.subr.bf16.mxu0 %v4309_v42  ;;  %2319 = vmatprep.subr.bf16.mxu1 %v4311_v43  ;;  %v4413_v42 = vcombine.high %v481_v32, %v529_v33  ;;  %v4415_v43 = vcombine.high %v482_v34, %v530_v35  ;;  %v160_v21 = vpack.c.bf16 %v64_v13, %v64_v13  ;;  %v435_v23 = vunpack.c.l.s8.bf16 %v262_v19 }
  0x5b   :  { %v4321_v28 = vcombine.high %v387_v22, %v435_v23 }
  0x60   :  { %2280 = vmatpush1.bf16.xpose.msra.mxu0 %v4308_v50  ;;  %2320 = vmatpush1.bf16.xpose.msra.mxu1 %v4310_v51  ;;  %v386_v50 = vunpack.c.h.s8.bf16 %v237_v44  ;;  %v434_v51 = vunpack.c.h.s8.bf16 %v261_v45 }
  0x61   :  { %2355 = vmatprep.subr.bf16.mxu0 %v4505_v52  ;;  %2395 = vmatprep.subr.bf16.mxu1 %v4507_v53  ;;  %v4412_v52 = vcombine.low %v481_v32, %v529_v33  ;;  %v4414_v53 = vcombine.low %v482_v34, %v530_v35  ;;  %v581_v32 = vunpack.c.l.s8.bf16 %v335_v30  ;;  %v629_v33 = vunpack.c.l.s8.bf16 %v359_v31 }
  0x62   :  { %v4319_v55 = vcombine.high %v386_v50, %v434_v51  ;;  %v582_v34 = vunpack.c.h.s8.bf16 %v335_v30  ;;  %v630_v35 = vunpack.c.h.s8.bf16 %v359_v31  ;;  %v240_v30 = vld [vmem:[#allocation4 + $0x38] sm:$0xff] }
  0x63   :  { %v4517_v38 = vcombine.high %v581_v32, %v629_v33  ;;  %v264_v31 = vld [vmem:[#allocation4 + $0xf8] sm:$0xff] }
  0x64   :  { %v4519_v39 = vcombine.high %v582_v34, %v630_v35 }
  0x67   :  { %2298 = vmatmul.mubr.bf16.vlgmr.msra.gmra.mxu0 %v145_v62  ;;  %2338 = vmatmul.mubr.bf16.vlgmr.msra.gmra.mxu1 %v147_v63  ;;  %v4316_v62 = vcombine.low %v385_v48, %v433_v49  ;;  %v4318_v63 = vcombine.low %v386_v50, %v434_v51  ;;  %v66_v50 = vld [vmem:[#allocation2 + $0xc8] sm:$0xff]  ;;  %v68_v51 = vld [vmem:[#allocation2 + $0xd8] sm:$0xff] }
  0x68   :  { %2356 = vmatpush1.bf16.xpose.msra.mxu0 %v4504_v2  ;;  %2396 = vmatpush1.bf16.xpose.msra.mxu1 %v4506_v3  ;;  %v286_v2 = vld [vmem:[#allocation4 + $0x1a8] sm:$0xff] }
  0x69   :  { %2357 = vmatprep.subr.bf16.mxu0 %v4409_v4  ;;  %2397 = vmatprep.subr.bf16.mxu1 %v4411_v5  ;;  %v310_v3 = vld [vmem:[#allocation4 + $0x268] sm:$0xff]  ;;  %v57_v4 = vld [vmem:[#allocation2 + $0x80] sm:$0xff]  ;;  %v59_v5 = vld [vmem:[#allocation2 + $0x90] sm:$0xff]  ;;  %v483_v6 = vunpack.c.l.s8.bf16 %v286_v2 }
  0x6a   :  { %2377 = vmatprep.mubr.bf16.mxu0 %v150_v8  ;;  %2417 = vmatprep.mubr.bf16.mxu1 %v152_v9  ;;  %v531_v7 = vunpack.c.l.s8.bf16 %v310_v3  ;;  %v484_v8 = vunpack.c.h.s8.bf16 %v286_v2  ;;  %v532_v9 = vunpack.c.h.s8.bf16 %v310_v3  ;;  %v153_v10 = vpack.c.bf16 %v57_v4, %v57_v4  ;;  %v336_v4 = vld [vmem:[#allocation4 + $0x338] sm:$0xff] }
  0x6b   :  { %v155_v11 = vpack.c.bf16 %v59_v5, %v59_v5  ;;  %v360_v5 = vld [vmem:[#allocation4 + $0x3f8] sm:$0xff] }
  0x70   :  { %2358 = vmatpush1.bf16.xpose.msra.mxu0 %v4408_v14  ;;  %2398 = vmatpush1.bf16.xpose.msra.mxu1 %v4410_v15  ;;  %v4512_v14 = vcombine.low %v579_v58, %v627_v59  ;;  %v4514_v15 = vcombine.low %v580_v60, %v628_v61  ;;  %v162_v58 = vpack.c.bf16 %v66_v50, %v66_v50  ;;  %v389_v60 = vunpack.c.l.s8.bf16 %v239_v56 }
  0x71   :  { %2359 = vmatprep.subr.bf16.mxu0 %v4313_v16  ;;  %2399 = vmatprep.subr.bf16.mxu1 %v4315_v17  ;;  %v4417_v16 = vcombine.high %v483_v6, %v531_v7  ;;  %v4419_v17 = vcombine.high %v484_v8, %v532_v9  ;;  %v164_v59 = vpack.c.bf16 %v68_v51, %v68_v51  ;;  %v437_v61 = vunpack.c.l.s8.bf16 %v263_v57 }
  0x73   :  { %v4325_v2 = vcombine.high %v389_v60, %v437_v61 }
  0x78   :  { %2360 = vmatpush1.bf16.xpose.msra.mxu0 %v4312_v24  ;;  %2400 = vmatpush1.bf16.xpose.msra.mxu1 %v4314_v25  ;;  %v388_v24 = vunpack.c.h.s8.bf16 %v238_v18  ;;  %v436_v25 = vunpack.c.h.s8.bf16 %v262_v19 }
  0x79   :  { %2435 = vmatprep.subr.bf16.mxu0 %v4509_v26  ;;  %2475 = vmatprep.subr.bf16.mxu1 %v4511_v27  ;;  %v4416_v26 = vcombine.low %v483_v6, %v531_v7  ;;  %v4418_v27 = vcombine.low %v484_v8, %v532_v9  ;;  %v583_v6 = vunpack.c.l.s8.bf16 %v336_v4  ;;  %v631_v7 = vunpack.c.l.s8.bf16 %v360_v5 }
  0x7a   :  { %v4323_v29 = vcombine.high %v388_v24, %v436_v25  ;;  %v584_v8 = vunpack.c.h.s8.bf16 %v336_v4  ;;  %v632_v9 = vunpack.c.h.s8.bf16 %v360_v5  ;;  %v241_v4 = vld [vmem:[#allocation4 + $0x40] sm:$0xff] }
  0x7b   :  { %v4521_v12 = vcombine.high %v583_v6, %v631_v7  ;;  %v265_v5 = vld [vmem:[#allocation4 + $0x100] sm:$0xff] }
  0x7c   :  { %v4523_v13 = vcombine.high %v584_v8, %v632_v9 }
  0x7f   :  { %2378 = vmatmul.mubr.bf16.vlgmr.msra.gmra.mxu0 %v149_v36  ;;  %2418 = vmatmul.mubr.bf16.vlgmr.msra.gmra.mxu1 %v151_v37  ;;  %v4320_v36 = vcombine.low %v387_v22, %v435_v23  ;;  %v4322_v37 = vcombine.low %v388_v24, %v436_v25  ;;  %v70_v24 = vld [vmem:[#allocation2 + $0xe8] sm:$0xff]  ;;  %v72_v25 = vld [vmem:[#allocation2 + $0xf8] sm:$0xff] }
  0x80   :  { %2436 = vmatpush1.bf16.xpose.msra.mxu0 %v4508_v40  ;;  %2476 = vmatpush1.bf16.xpose.msra.mxu1 %v4510_v41  ;;  %v287_v40 = vld [vmem:[#allocation4 + $0x1b0] sm:$0xff] }
  0x81   :  { %2437 = vmatprep.subr.bf16.mxu0 %v4413_v42  ;;  %2477 = vmatprep.subr.bf16.mxu1 %v4415_v43  ;;  %v311_v41 = vld [vmem:[#allocation4 + $0x270] sm:$0xff]  ;;  %v61_v42 = vld [vmem:[#allocation2 + $0xa0] sm:$0xff]  ;;  %v485_v44 = vunpack.c.l.s8.bf16 %v287_v40 }
  0x82   :  { %2457 = vmatprep.mubr.bf16.mxu0 %v154_v46  ;;  %2497 = vmatprep.mubr.bf16.mxu1 %v156_v47  ;;  %v63_v43 = vld [vmem:[#allocation2 + $0xb0] sm:$0xff]  ;;  %v533_v45 = vunpack.c.l.s8.bf16 %v311_v41  ;;  %v486_v46 = vunpack.c.h.s8.bf16 %v287_v40  ;;  %v534_v47 = vunpack.c.h.s8.bf16 %v311_v41  ;;  %v157_v48 = vpack.c.bf16 %v61_v42, %v61_v42  ;;  %v337_v42 = vld [vmem:[#allocation4 + $0x340] sm:$0xff] }
  0x83   :  { %v159_v49 = vpack.c.bf16 %v63_v43, %v63_v43  ;;  %v361_v43 = vld [vmem:[#allocation4 + $0x400] sm:$0xff] }
  0x88   :  { %2438 = vmatpush1.bf16.xpose.msra.mxu0 %v4412_v52  ;;  %2478 = vmatpush1.bf16.xpose.msra.mxu1 %v4414_v53  ;;  %v4516_v52 = vcombine.low %v581_v32, %v629_v33  ;;  %v4518_v53 = vcombine.low %v582_v34, %v630_v35  ;;  %v166_v32 = vpack.c.bf16 %v70_v24, %v70_v24  ;;  %v391_v34 = vunpack.c.l.s8.bf16 %v240_v30 }
  0x89   :  { %2439 = vmatprep.subr.bf16.mxu0 %v4317_v54  ;;  %2479 = vmatprep.subr.bf16.mxu1 %v4319_v55  ;;  %v4421_v54 = vcombine.high %v485_v44, %v533_v45  ;;  %v4423_v55 = vcombine.high %v486_v46, %v534_v47  ;;  %v168_v33 = vpack.c.bf16 %v72_v25, %v72_v25  ;;  %v439_v35 = vunpack.c.l.s8.bf16 %v264_v31 }
  0x8b   :  { %v4329_v40 = vcombine.high %v391_v34, %v439_v35 }
  0x90   :  { %2440 = vmatpush1.bf16.xpose.msra.mxu0 %v4316_v62  ;;  %2480 = vmatpush1.bf16.xpose.msra.mxu1 %v4318_v63  ;;  %v390_v62 = vunpack.c.h.s8.bf16 %v239_v56  ;;  %v438_v63 = vunpack.c.h.s8.bf16 %v263_v57 }
  0x91   :  { %2515 = vmatprep.subr.bf16.mxu0 %v4513_v0  ;;  %2555 = vmatprep.subr.bf16.mxu1 %v4515_v1  ;;  %v4420_v0 = vcombine.low %v485_v44, %v533_v45  ;;  %v4422_v1 = vcombine.low %v486_v46, %v534_v47  ;;  %v585_v44 = vunpack.c.l.s8.bf16 %v337_v42  ;;  %v633_v45 = vunpack.c.l.s8.bf16 %v361_v43 }
  0x92   :  { %v4327_v3 = vcombine.high %v390_v62, %v438_v63  ;;  %v586_v46 = vunpack.c.h.s8.bf16 %v337_v42  ;;  %v634_v47 = vunpack.c.h.s8.bf16 %v361_v43  ;;  %v242_v42 = vld [vmem:[#allocation4 + $0x48] sm:$0xff] }
  0x93   :  { %v4525_v50 = vcombine.high %v585_v44, %v633_v45  ;;  %v266_v43 = vld [vmem:[#allocation4 + $0x108] sm:$0xff] }
  0x94   :  { %v4527_v51 = vcombine.high %v586_v46, %v634_v47 }
  0x97   :  { %2458 = vmatmul.mubr.bf16.vlgmr.msra.gmra.mxu0 %v153_v10  ;;  %2498 = vmatmul.mubr.bf16.vlgmr.msra.gmra.mxu1 %v155_v11  ;;  %v4324_v10 = vcombine.low %v389_v60, %v437_v61  ;;  %v4326_v11 = vcombine.low %v390_v62, %v438_v63  ;;  %v74_v62 = vld [vmem:[#allocation2 + $0x108] sm:$0xff]  ;;  %v76_v63 = vld [vmem:[#allocation2 + $0x118] sm:$0xff] }
  0x98   :  { %2516 = vmatpush1.bf16.xpose.msra.mxu0 %v4512_v14  ;;  %2556 = vmatpush1.bf16.xpose.msra.mxu1 %v4514_v15  ;;  %v288_v14 = vld [vmem:[#allocation4 + $0x1b8] sm:$0xff] }
  0x99   :  { %2517 = vmatprep.subr.bf16.mxu0 %v4417_v16  ;;  %2557 = vmatprep.subr.bf16.mxu1 %v4419_v17  ;;  %v312_v15 = vld [vmem:[#allocation4 + $0x278] sm:$0xff]  ;;  %v65_v16 = vld [vmem:[#allocation2 + $0xc0] sm:$0xff]  ;;  %v67_v17 = vld [vmem:[#allocation2 + $0xd0] sm:$0xff]  ;;  %v487_v18 = vunpack.c.l.s8.bf16 %v288_v14 }
  0x9a   :  { %2537 = vmatprep.mubr.bf16.mxu0 %v158_v20  ;;  %2577 = vmatprep.mubr.bf16.mxu1 %v160_v21  ;;  %v535_v19 = vunpack.c.l.s8.bf16 %v312_v15  ;;  %v488_v20 = vunpack.c.h.s8.bf16 %v288_v14  ;;  %v536_v21 = vunpack.c.h.s8.bf16 %v312_v15  ;;  %v161_v22 = vpack.c.bf16 %v65_v16, %v65_v16  ;;  %v338_v16 = vld [vmem:[#allocation4 + $0x348] sm:$0xff] }
  0x9b   :  { %v163_v23 = vpack.c.bf16 %v67_v17, %v67_v17  ;;  %v362_v17 = vld [vmem:[#allocation4 + $0x408] sm:$0xff] }
  0xa0   :  { %2518 = vmatpush1.bf16.xpose.msra.mxu0 %v4416_v26  ;;  %2558 = vmatpush1.bf16.xpose.msra.mxu1 %v4418_v27  ;;  %v4520_v26 = vcombine.low %v583_v6, %v631_v7  ;;  %v4522_v27 = vcombine.low %v584_v8, %v632_v9  ;;  %v170_v6 = vpack.c.bf16 %v74_v62, %v74_v62  ;;  %v393_v8 = vunpack.c.l.s8.bf16 %v241_v4 }
  0xa1   :  { %2519 = vmatprep.subr.bf16.mxu0 %v4321_v28  ;;  %2559 = vmatprep.subr.bf16.mxu1 %v4323_v29  ;;  %v4425_v28 = vcombine.high %v487_v18, %v535_v19  ;;  %v4427_v29 = vcombine.high %v488_v20, %v536_v21  ;;  %v172_v7 = vpack.c.bf16 %v76_v63, %v76_v63  ;;  %v441_v9 = vunpack.c.l.s8.bf16 %v265_v5  ;;  %v339_v63 = vld [vmem:[#allocation4 + $0x350] sm:$0xff] }
  0xa3   :  { %v4333_v14 = vcombine.high %v393_v8, %v441_v9 }
  0xa8   :  { %2520 = vmatpush1.bf16.xpose.msra.mxu0 %v4320_v36  ;;  %2560 = vmatpush1.bf16.xpose.msra.mxu1 %v4322_v37  ;;  %v392_v36 = vunpack.c.h.s8.bf16 %v240_v30  ;;  %v440_v37 = vunpack.c.h.s8.bf16 %v264_v31 }
  0xa9   :  { %2595 = vmatprep.subr.bf16.mxu0 %v4517_v38  ;;  %2635 = vmatprep.subr.bf16.mxu1 %v4519_v39  ;;  %v4424_v38 = vcombine.low %v487_v18, %v535_v19  ;;  %v4426_v39 = vcombine.low %v488_v20, %v536_v21  ;;  %v587_v18 = vunpack.c.l.s8.bf16 %v338_v16  ;;  %v635_v19 = vunpack.c.l.s8.bf16 %v362_v17 }
  0xaa   :  { %v4331_v41 = vcombine.high %v392_v36, %v440_v37  ;;  %v588_v20 = vunpack.c.h.s8.bf16 %v338_v16  ;;  %v636_v21 = vunpack.c.h.s8.bf16 %v362_v17 }
  0xab   :  { %v4529_v24 = vcombine.high %v587_v18, %v635_v19 }
  0xac   :  { %v4531_v25 = vcombine.high %v588_v20, %v636_v21 }
  0xaf   :  { %2538 = vmatmul.mubr.bf16.vlgmr.msra.gmra.mxu0 %v157_v48  ;;  %2578 = vmatmul.mubr.bf16.vlgmr.msra.gmra.mxu1 %v159_v49  ;;  %v4328_v48 = vcombine.low %v391_v34, %v439_v35  ;;  %v4330_v49 = vcombine.low %v392_v36, %v440_v37  ;;  %v78_v36 = vld [vmem:[#allocation2 + $0x128] sm:$0xff]  ;;  %v80_v37 = vld [vmem:[#allocation2 + $0x138] sm:$0xff] }
  0xb0   :  { %2596 = vmatpush1.bf16.xpose.msra.mxu0 %v4516_v52  ;;  %2636 = vmatpush1.bf16.xpose.msra.mxu1 %v4518_v53  ;;  %v289_v52 = vld [vmem:[#allocation4 + $0x1c0] sm:$0xff] }
  0xb1   :  { %2597 = vmatprep.subr.bf16.mxu0 %v4421_v54  ;;  %2637 = vmatprep.subr.bf16.mxu1 %v4423_v55  ;;  %v313_v53 = vld [vmem:[#allocation4 + $0x280] sm:$0xff]  ;;  %v71_v55 = vld [vmem:[#allocation2 + $0xf0] sm:$0xff]  ;;  %v489_v56 = vunpack.c.l.s8.bf16 %v289_v52 }
  0xb2   :  { %2617 = vmatprep.mubr.bf16.mxu0 %v162_v58  ;;  %2657 = vmatprep.mubr.bf16.mxu1 %v164_v59  ;;  %v69_v54 = vld [vmem:[#allocation2 + $0xe0] sm:$0xff]  ;;  %v537_v57 = vunpack.c.l.s8.bf16 %v313_v53  ;;  %v490_v58 = vunpack.c.h.s8.bf16 %v289_v52  ;;  %v538_v59 = vunpack.c.h.s8.bf16 %v313_v53  ;;  %v167_v61 = vpack.c.bf16 %v71_v55, %v71_v55 }
  0xb3   :  { %v165_v60 = vpack.c.bf16 %v69_v54, %v69_v54  ;;  %v443_v52 = vunpack.c.l.s8.bf16 %v266_v43  ;;  %v396_v53 = vunpack.c.h.s8.bf16 %v242_v42  ;;  %v444_v54 = vunpack.c.h.s8.bf16 %v266_v43 }
  0xb5   :  { %v4339_v62 = vcombine.high %v396_v53, %v444_v54 }
  0xb8   :  { %2598 = vmatpush1.bf16.xpose.msra.mxu0 %v4420_v0  ;;  %2638 = vmatpush1.bf16.xpose.msra.mxu1 %v4422_v1  ;;  %v4524_v0 = vcombine.low %v585_v44, %v633_v45  ;;  %v4526_v1 = vcombine.low %v586_v46, %v634_v47  ;;  %v174_v44 = vpack.c.bf16 %v78_v36, %v78_v36 }
  0xb9   :  { %2599 = vmatprep.subr.bf16.mxu0 %v4325_v2  ;;  %2639 = vmatprep.subr.bf16.mxu1 %v4327_v3  ;;  %v4429_v2 = vcombine.high %v489_v56, %v537_v57  ;;  %v4431_v3 = vcombine.high %v490_v58, %v538_v59  ;;  %v176_v45 = vpack.c.bf16 %v80_v37, %v80_v37 }
  0xc0   :  { %2600 = vmatpush1.bf16.xpose.msra.mxu0 %v4324_v10  ;;  %2640 = vmatpush1.bf16.xpose.msra.mxu1 %v4326_v11  ;;  %v394_v10 = vunpack.c.h.s8.bf16 %v241_v4  ;;  %v442_v11 = vunpack.c.h.s8.bf16 %v265_v5 }
  0xc1   :  { %2675 = vmatprep.subr.bf16.mxu0 %v4521_v12  ;;  %2715 = vmatprep.subr.bf16.mxu1 %v4523_v13  ;;  %v4428_v12 = vcombine.low %v489_v56, %v537_v57  ;;  %v4430_v13 = vcombine.low %v490_v58, %v538_v59 }
  0xc2   :  { %v4335_v15 = vcombine.high %v394_v10, %v442_v11 }
  0xc7   :  { %2618 = vmatmul.mubr.bf16.vlgmr.msra.gmra.mxu0 %v161_v22  ;;  %2658 = vmatmul.mubr.bf16.vlgmr.msra.gmra.mxu1 %v163_v23  ;;  %v4332_v22 = vcombine.low %v393_v8, %v441_v9  ;;  %v4334_v23 = vcombine.low %v394_v10, %v442_v11  ;;  %v291_v9 = vld [vmem:[#allocation4 + $0x1d0] sm:$0xff]  ;;  %v77_v11 = vld [vmem:[#allocation2 + $0x120] sm:$0xff] }
  0xc8   :  { %2676 = vmatpush1.bf16.xpose.msra.mxu0 %v4520_v26  ;;  %2716 = vmatpush1.bf16.xpose.msra.mxu1 %v4522_v27  ;;  %v290_v26 = vld [vmem:[#allocation4 + $0x1c8] sm:$0xff]  ;;  %v315_v10 = vld [vmem:[#allocation4 + $0x290] sm:$0xff]  ;;  %v173_v17 = vpack.c.bf16 %v77_v11, %v77_v11 }
  0xc9   :  { %2677 = vmatprep.subr.bf16.mxu0 %v4425_v28  ;;  %2717 = vmatprep.subr.bf16.mxu1 %v4427_v29  ;;  %v314_v27 = vld [vmem:[#allocation4 + $0x288] sm:$0xff]  ;;  %v73_v28 = vld [vmem:[#allocation2 + $0x100] sm:$0xff]  ;;  %v75_v29 = vld [vmem:[#allocation2 + $0x110] sm:$0xff]  ;;  %v491_v30 = vunpack.c.l.s8.bf16 %v290_v26  ;;  %v542_v16 = vunpack.c.h.s8.bf16 %v315_v10 }
  0xca   :  { %2697 = vmatprep.mubr.bf16.mxu0 %v166_v32  ;;  %2737 = vmatprep.mubr.bf16.mxu1 %v168_v33  ;;  %v539_v31 = vunpack.c.l.s8.bf16 %v314_v27  ;;  %v492_v32 = vunpack.c.h.s8.bf16 %v290_v26  ;;  %v540_v33 = vunpack.c.h.s8.bf16 %v314_v27  ;;  %v169_v34 = vpack.c.bf16 %v73_v28, %v73_v28  ;;  %v267_v26 = vld [vmem:[#allocation4 + $0x110] sm:$0xff] }
  0xcb   :  { %v171_v35 = vpack.c.bf16 %v75_v29, %v75_v29  ;;  %v446_v37 = vunpack.c.h.s8.bf16 %v267_v26 }
  0xcc   :  { %v4432_v57 = vcombine.low %v491_v30, %v539_v31  ;;  %v4434_v58 = vcombine.low %v492_v32, %v540_v33 }
  0xd0   :  { %2678 = vmatpush1.bf16.xpose.msra.mxu0 %v4424_v38  ;;  %2718 = vmatpush1.bf16.xpose.msra.mxu1 %v4426_v39  ;;  %v4528_v38 = vcombine.low %v587_v18, %v635_v19  ;;  %v4530_v39 = vcombine.low %v588_v20, %v636_v21  ;;  %v82_v19 = vld [vmem:[#allocation2 + $0x148] sm:$0xff]  ;;  %v84_v20 = vld [vmem:[#allocation2 + $0x158] sm:$0xff] }
  0xd1   :  { %2679 = vmatprep.subr.bf16.mxu0 %v4329_v40  ;;  %2719 = vmatprep.subr.bf16.mxu1 %v4331_v41  ;;  %v4433_v40 = vcombine.high %v491_v30, %v539_v31  ;;  %v4435_v41 = vcombine.high %v492_v32, %v540_v33  ;;  %v178_v27 = vpack.c.bf16 %v82_v19, %v82_v19 }
  0xd2   :  { %v180_v28 = vpack.c.bf16 %v84_v20, %v84_v20 }
  0xd8   :  { %2680 = vmatpush1.bf16.xpose.msra.mxu0 %v4328_v48  ;;  %2720 = vmatpush1.bf16.xpose.msra.mxu1 %v4330_v49 }
  0xd9   :  { %2755 = vmatprep.subr.bf16.mxu0 %v4525_v50  ;;  %2795 = vmatprep.subr.bf16.mxu1 %v4527_v51  ;;  %v395_v51 = vunpack.c.l.s8.bf16 %v242_v42 }
  0xdb   :  { %v4336_v5 = vcombine.low %v395_v51, %v443_v52 }
  0xdf   :  { %2698 = vmatmul.mubr.bf16.vlgmr.msra.gmra.mxu0 %v165_v60  ;;  %2738 = vmatmul.mubr.bf16.vlgmr.msra.gmra.mxu1 %v167_v61  ;;  %v4337_v61 = vcombine.high %v395_v51, %v443_v52 }
  0xe0   :  { %2756 = vmatpush1.bf16.xpose.msra.mxu0 %v4524_v0  ;;  %2796 = vmatpush1.bf16.xpose.msra.mxu1 %v4526_v1  ;;  %v363_v0 = vld [vmem:[#allocation4 + $0x410] sm:$0xff]  ;;  %v589_v1 = vunpack.c.l.s8.bf16 %v339_v63 }
  0xe1   :  { %2757 = vmatprep.subr.bf16.mxu0 %v4429_v2  ;;  %2797 = vmatprep.subr.bf16.mxu1 %v4431_v3  ;;  %v637_v2 = vunpack.c.l.s8.bf16 %v363_v0  ;;  %v590_v3 = vunpack.c.h.s8.bf16 %v339_v63  ;;  %v638_v4 = vunpack.c.h.s8.bf16 %v363_v0 }
  0xe2   :  { %2777 = vmatprep.mubr.bf16.mxu0 %v170_v6  ;;  %2817 = vmatprep.mubr.bf16.mxu1 %v172_v7  ;;  %v4338_v6 = vcombine.low %v396_v53, %v444_v54 }
  0xe3   :  { %v4533_v7 = vcombine.high %v589_v1, %v637_v2  ;;  %v4535_v8 = vcombine.high %v590_v3, %v638_v4  ;;  %v4532_v21 = vcombine.low %v589_v1, %v637_v2 }
  0xe8   :  { %2758 = vmatpush1.bf16.xpose.msra.mxu0 %v4428_v12  ;;  %2798 = vmatpush1.bf16.xpose.msra.mxu1 %v4430_v13  ;;  %v79_v12 = vld [vmem:[#allocation2 + $0x130] sm:$0xff]  ;;  %v493_v13 = vunpack.c.l.s8.bf16 %v291_v9 }
  0xe9   :  { %2759 = vmatprep.subr.bf16.mxu0 %v4333_v14  ;;  %2799 = vmatprep.subr.bf16.mxu1 %v4335_v15  ;;  %v541_v14 = vunpack.c.l.s8.bf16 %v315_v10  ;;  %v494_v15 = vunpack.c.h.s8.bf16 %v291_v9  ;;  %v175_v18 = vpack.c.bf16 %v79_v12, %v79_v12  ;;  %v244_v9 = vld [vmem:[#allocation4 + $0x58] sm:$0xff] }
  0xea   :  { %v268_v10 = vld [vmem:[#allocation4 + $0x118] sm:$0xff]  ;;  %v400_v20 = vunpack.c.h.s8.bf16 %v244_v9 }
  0xeb   :  { %v4438_v42 = vcombine.low %v494_v15, %v542_v16  ;;  %v447_v19 = vunpack.c.l.s8.bf16 %v268_v10 }
  0xf0   :  { %2760 = vmatpush1.bf16.xpose.msra.mxu0 %v4332_v22  ;;  %2800 = vmatpush1.bf16.xpose.msra.mxu1 %v4334_v23  ;;  %v4534_v22 = vcombine.low %v590_v3, %v638_v4  ;;  %v4437_v23 = vcombine.high %v493_v13, %v541_v14  ;;  %v86_v3 = vld [vmem:[#allocation2 + $0x168] sm:$0xff]  ;;  %v88_v4 = vld [vmem:[#allocation2 + $0x178] sm:$0xff] }
  0xf1   :  { %2835 = vmatprep.subr.bf16.mxu0 %v4529_v24  ;;  %2875 = vmatprep.subr.bf16.mxu1 %v4531_v25  ;;  %v4439_v24 = vcombine.high %v494_v15, %v542_v16  ;;  %v243_v25 = vld [vmem:[#allocation4 + $0x50] sm:$0xff]  ;;  %v182_v11 = vpack.c.bf16 %v86_v3, %v86_v3  ;;  %v184_v12 = vpack.c.bf16 %v88_v4, %v88_v4 }
  0xf2   :  { %v398_v36 = vunpack.c.h.s8.bf16 %v243_v25 }
  0xf4   :  { %v4342_v54 = vcombine.low %v398_v36, %v446_v37 }
  0xf7   :  { %v2139_v46 = vpop.f32.mrf.mxu0  ;;  %v2179_v47 = vpop.f32.mrf.mxu1  ;;  %2778 = vmatmul.mubr.bf16.vlgmr.msra.gmra.mxu0 %v169_v34  ;;  %2818 = vmatmul.mubr.bf16.vlgmr.msra.gmra.mxu1 %v171_v35  ;;  %v397_v34 = vunpack.c.l.s8.bf16 %v243_v25  ;;  %v445_v35 = vunpack.c.l.s8.bf16 %v267_v26 }
  0xf8   :  { %v4724_v48 = vadd.f32 %v2179_v47, %v2139_v46  ;;  %2836 = vmatpush1.bf16.xpose.msra.mxu0 %v4528_v38  ;;  %2876 = vmatpush1.bf16.xpose.msra.mxu1 %v4530_v39  ;;  %v4343_v46 = vcombine.high %v398_v36, %v446_v37  ;;  %v340_v47 = vld [vmem:[#allocation4 + $0x358] sm:$0xff] }
  0xf9   :  { %v2141_v49 = vpop.f32.mrf.mxu0  ;;  %v2181_v50 = vpop.f32.mrf.mxu1  ;;  %2837 = vmatprep.subr.bf16.mxu0 %v4433_v40  ;;  %2877 = vmatprep.subr.bf16.mxu1 %v4435_v41  ;;  %v4436_v41 = vcombine.low %v493_v13, %v541_v14  ;;  %v592_v51 = vunpack.c.h.s8.bf16 %v340_v47  ;;  %v4340_v53 = vcombine.low %v397_v34, %v445_v35 }
  0xfa   :  { %2857 = vmatprep.mubr.bf16.mxu0 %v174_v44  ;;  %2897 = vmatprep.mubr.bf16.mxu1 %v176_v45  ;;  %v4341_v45 = vcombine.high %v397_v34, %v445_v35  ;;  %v591_v49 = vunpack.c.l.s8.bf16 %v340_v47 }
  0xfb   :  { %v2142_v55 = vpop.f32.mrf.mxu0  ;;  %v2182_v56 = vpop.f32.mrf.mxu1 }
  0xfd   :  { %v2143_v59 = vpop.f32.mrf.mxu0  ;;  %v2183_v60 = vpop.f32.mrf.mxu1 }
  0xfe   :  { %v81_v59 = vld [vmem:[#allocation2 + $0x140] sm:$0xff]  ;;  %v83_v60 = vld [vmem:[#allocation2 + $0x150] sm:$0xff] }
  0xff   :  { %v177_v1 = vpack.c.bf16 %v81_v59, %v81_v59  ;;  %v179_v2 = vpack.c.bf16 %v83_v60, %v83_v60 }
 0x100   :  { %2838 = vmatpush1.bf16.xpose.msra.mxu0 %v4432_v57  ;;  %2878 = vmatpush1.bf16.xpose.msra.mxu1 %v4434_v58  ;;  %v292_v57 = vld [vmem:[#allocation4 + $0x1d8] sm:$0xff] }
 0x101   :  { %2839 = vmatprep.subr.bf16.mxu0 %v4337_v61  ;;  %2879 = vmatprep.subr.bf16.mxu1 %v4339_v62  ;;  %v316_v58 = vld [vmem:[#allocation4 + $0x298] sm:$0xff]  ;;  %v495_v61 = vunpack.c.l.s8.bf16 %v292_v57  ;;  %v496_v63 = vunpack.c.h.s8.bf16 %v292_v57  ;;  %v245_v57 = vld [vmem:[#allocation4 + $0x60] sm:$0xff] }
 0x102   :  { %v543_v62 = vunpack.c.l.s8.bf16 %v316_v58  ;;  %v544_v0 = vunpack.c.h.s8.bf16 %v316_v58  ;;  %v269_v58 = vld [vmem:[#allocation4 + $0x120] sm:$0xff]  ;;  %v402_v4 = vunpack.c.h.s8.bf16 %v245_v57 }
 0x103   :  { %v449_v3 = vunpack.c.l.s8.bf16 %v269_v58 }
 0x104   :  { %v4440_v25 = vcombine.low %v495_v61, %v543_v62  ;;  %v4442_v26 = vcombine.low %v496_v63, %v544_v0 }
 0x108   :  { %2840 = vmatpush1.bf16.xpose.msra.mxu0 %v4336_v5  ;;  %2880 = vmatpush1.bf16.xpose.msra.mxu1 %v4338_v6 }
 0x109   :  { %2915 = vmatprep.subr.bf16.mxu0 %v4533_v7  ;;  %2955 = vmatprep.subr.bf16.mxu1 %v4535_v8  ;;  %v4441_v7 = vcombine.high %v495_v61, %v543_v62  ;;  %v4443_v8 = vcombine.high %v496_v63, %v544_v0 }
 0x10f   :  { %v2219_v29 = vpop.f32.mrf.mxu0  ;;  %v2259_v30 = vpop.f32.mrf.mxu1  ;;  %2858 = vmatmul.mubr.bf16.vlgmr.msra.gmra.mxu0 %v173_v17  ;;  %2898 = vmatmul.mubr.bf16.vlgmr.msra.gmra.mxu1 %v175_v18  ;;  %v399_v18 = vunpack.c.l.s8.bf16 %v244_v9 }
 0x110   :  { %v2220_v31 = vadd.f32 %v2219_v29, %v4724_v48  ;;  %2916 = vmatpush1.bf16.xpose.msra.mxu0 %v4532_v21  ;;  %2956 = vmatpush1.bf16.xpose.msra.mxu1 %v4534_v22  ;;  %v364_v48 = vld [vmem:[#allocation4 + $0x418] sm:$0xff]  ;;  %v448_v21 = vunpack.c.h.s8.bf16 %v268_v10 }
 0x111   :  { %v2221_v32 = vpop.f32.mrf.mxu0  ;;  %v2261_v33 = vpop.f32.mrf.mxu1  ;;  %2917 = vmatprep.subr.bf16.mxu0 %v4437_v23  ;;  %2957 = vmatprep.subr.bf16.mxu1 %v4439_v24  ;;  %v639_v50 = vunpack.c.l.s8.bf16 %v364_v48  ;;  %v640_v52 = vunpack.c.h.s8.bf16 %v364_v48  ;;  %v4345_v29 = vcombine.high %v399_v18, %v447_v19  ;;  %v4344_v37 = vcombine.low %v399_v18, %v447_v19 }
 0x112   :  { %v2260_v38 = vadd.f32 %v2259_v30, %v2220_v31  ;;  %2937 = vmatprep.mubr.bf16.mxu0 %v178_v27  ;;  %2977 = vmatprep.mubr.bf16.mxu1 %v180_v28  ;;  %v4347_v30 = vcombine.high %v400_v20, %v448_v21  ;;  %v341_v31 = vld [vmem:[#allocation4 + $0x360] sm:$0xff] }
 0x113   :  { %v2222_v39 = vpop.f32.mrf.mxu0  ;;  %v2262_v40 = vpop.f32.mrf.mxu1  ;;  %v4537_v55 = vcombine.high %v591_v49, %v639_v50  ;;  %v4539_v56 = vcombine.high %v592_v51, %v640_v52  ;;  %v4536_v5 = vcombine.low %v591_v49, %v639_v50  ;;  %v4538_v6 = vcombine.low %v592_v51, %v640_v52  ;;  %v365_v32 = vld [vmem:[#allocation4 + $0x420] sm:$0xff]  ;;  %v90_v51 = vld [vmem:[#allocation2 + $0x188] sm:$0xff]  ;;  %v92_v52 = vld [vmem:[#allocation2 + $0x198] sm:$0xff] }
 0x114   :  { %v593_v33 = vunpack.c.l.s8.bf16 %v341_v31  ;;  %v641_v34 = vunpack.c.l.s8.bf16 %v365_v32  ;;  %v594_v35 = vunpack.c.h.s8.bf16 %v341_v31  ;;  %v642_v36 = vunpack.c.h.s8.bf16 %v365_v32 }
 0x115   :  { %v2223_v43 = vpop.f32.mrf.mxu0  ;;  %v2263_v44 = vpop.f32.mrf.mxu1  ;;  %v186_v59 = vpack.c.bf16 %v90_v51, %v90_v51  ;;  %v188_v60 = vpack.c.bf16 %v92_v52, %v92_v52 }
 0x116   :  { %v4541_v39 = vcombine.high %v593_v33, %v641_v34  ;;  %v4543_v40 = vcombine.high %v594_v35, %v642_v36  ;;  %v85_v43 = vld [vmem:[#allocation2 + $0x160] sm:$0xff]  ;;  %v87_v44 = vld [vmem:[#allocation2 + $0x170] sm:$0xff] }
 0x117   :  { %v181_v49 = vpack.c.bf16 %v85_v43, %v85_v43  ;;  %v183_v50 = vpack.c.bf16 %v87_v44, %v87_v44 }
 0x118   :  { %2918 = vmatpush1.bf16.xpose.msra.mxu0 %v4436_v41  ;;  %2958 = vmatpush1.bf16.xpose.msra.mxu1 %v4438_v42  ;;  %v293_v41 = vld [vmem:[#allocation4 + $0x1e0] sm:$0xff] }
 0x119   :  { %2919 = vmatprep.subr.bf16.mxu0 %v4341_v45  ;;  %2959 = vmatprep.subr.bf16.mxu1 %v4343_v46  ;;  %v317_v42 = vld [vmem:[#allocation4 + $0x2a0] sm:$0xff]  ;;  %v497_v45 = vunpack.c.l.s8.bf16 %v293_v41  ;;  %v498_v47 = vunpack.c.h.s8.bf16 %v293_v41  ;;  %v246_v41 = vld [vmem:[#allocation4 + $0x68] sm:$0xff] }
 0x11a   :  { %v545_v46 = vunpack.c.l.s8.bf16 %v317_v42  ;;  %v546_v48 = vunpack.c.h.s8.bf16 %v317_v42  ;;  %v270_v42 = vld [vmem:[#allocation4 + $0x128] sm:$0xff]  ;;  %v404_v52 = vunpack.c.h.s8.bf16 %v246_v41 }
 0x11b   :  { %v451_v51 = vunpack.c.l.s8.bf16 %v270_v42 }
 0x11c   :  { %v4444_v9 = vcombine.low %v497_v45, %v545_v46  ;;  %v4446_v10 = vcombine.low %v498_v47, %v546_v48 }
 0x120   :  { %2920 = vmatpush1.bf16.xpose.msra.mxu0 %v4340_v53  ;;  %2960 = vmatpush1.bf16.xpose.msra.mxu1 %v4342_v54  ;;  %v4540_v53 = vcombine.low %v593_v33, %v641_v34  ;;  %v4542_v54 = vcombine.low %v594_v35, %v642_v36  ;;  %v94_v35 = vld [vmem:[#allocation2 + $0x1a8] sm:$0xff]  ;;  %v96_v36 = vld [vmem:[#allocation2 + $0x1b8] sm:$0xff] }
 0x121   :  { %2995 = vmatprep.subr.bf16.mxu0 %v4537_v55  ;;  %3035 = vmatprep.subr.bf16.mxu1 %v4539_v56  ;;  %v4445_v55 = vcombine.high %v497_v45, %v545_v46  ;;  %v4447_v56 = vcombine.high %v498_v47, %v546_v48  ;;  %v190_v43 = vpack.c.bf16 %v94_v35, %v94_v35 }
 0x122   :  { %v192_v44 = vpack.c.bf16 %v96_v36, %v96_v36 }
 0x127   :  { %v2299_v13 = vpop.f32.mrf.mxu0  ;;  %v2339_v14 = vpop.f32.mrf.mxu1  ;;  %2938 = vmatmul.mubr.bf16.vlgmr.msra.gmra.mxu0 %v177_v1  ;;  %2978 = vmatmul.mubr.bf16.vlgmr.msra.gmra.mxu1 %v179_v2  ;;  %v401_v2 = vunpack.c.l.s8.bf16 %v245_v57 }
 0x128   :  { %v2300_v15 = vadd.f32 %v2299_v13, %v2260_v38  ;;  %2996 = vmatpush1.bf16.xpose.msra.mxu0 %v4536_v5  ;;  %3036 = vmatpush1.bf16.xpose.msra.mxu1 %v4538_v6  ;;  %v4346_v38 = vcombine.low %v400_v20, %v448_v21  ;;  %v450_v5 = vunpack.c.h.s8.bf16 %v269_v58 }
 0x129   :  { %v2301_v16 = vpop.f32.mrf.mxu0  ;;  %v2341_v17 = vpop.f32.mrf.mxu1  ;;  %2997 = vmatprep.subr.bf16.mxu0 %v4441_v7  ;;  %3037 = vmatprep.subr.bf16.mxu1 %v4443_v8  ;;  %v4349_v13 = vcombine.high %v401_v2, %v449_v3  ;;  %v4348_v21 = vcombine.low %v401_v2, %v449_v3 }
 0x12a   :  { %v2340_v22 = vadd.f32 %v2339_v14, %v2300_v15  ;;  %3017 = vmatprep.mubr.bf16.mxu0 %v182_v11  ;;  %3057 = vmatprep.mubr.bf16.mxu1 %v184_v12  ;;  %v4351_v14 = vcombine.high %v402_v4, %v450_v5  ;;  %v342_v15 = vld [vmem:[#allocation4 + $0x368] sm:$0xff] }
 0x12b   :  { %v2302_v23 = vpop.f32.mrf.mxu0  ;;  %v2342_v24 = vpop.f32.mrf.mxu1  ;;  %v366_v16 = vld [vmem:[#allocation4 + $0x428] sm:$0xff]  ;;  %v595_v17 = vunpack.c.l.s8.bf16 %v342_v15  ;;  %v596_v19 = vunpack.c.h.s8.bf16 %v342_v15 }
 0x12c   :  { %v643_v18 = vunpack.c.l.s8.bf16 %v366_v16  ;;  %v644_v20 = vunpack.c.h.s8.bf16 %v366_v16 }
 0x12d   :  { %v2303_v27 = vpop.f32.mrf.mxu0  ;;  %v2343_v28 = vpop.f32.mrf.mxu1 }
 0x12e   :  { %v4545_v23 = vcombine.high %v595_v17, %v643_v18  ;;  %v4547_v24 = vcombine.high %v596_v19, %v644_v20  ;;  %v89_v27 = vld [vmem:[#allocation2 + $0x180] sm:$0xff]  ;;  %v91_v28 = vld [vmem:[#allocation2 + $0x190] sm:$0xff] }
 0x12f   :  { %v185_v33 = vpack.c.bf16 %v89_v27, %v89_v27  ;;  %v187_v34 = vpack.c.bf16 %v91_v28, %v91_v28 }
 0x130   :  { %2998 = vmatpush1.bf16.xpose.msra.mxu0 %v4440_v25  ;;  %3038 = vmatpush1.bf16.xpose.msra.mxu1 %v4442_v26  ;;  %v294_v25 = vld [vmem:[#allocation4 + $0x1e8] sm:$0xff] }
 0x131   :  { %2999 = vmatprep.subr.bf16.mxu0 %v4345_v29  ;;  %3039 = vmatprep.subr.bf16.mxu1 %v4347_v30  ;;  %v318_v26 = vld [vmem:[#allocation4 + $0x2a8] sm:$0xff]  ;;  %v499_v29 = vunpack.c.l.s8.bf16 %v294_v25  ;;  %v500_v31 = vunpack.c.h.s8.bf16 %v294_v25  ;;  %v247_v25 = vld [vmem:[#allocation4 + $0x70] sm:$0xff] }
 0x132   :  { %v547_v30 = vunpack.c.l.s8.bf16 %v318_v26  ;;  %v548_v32 = vunpack.c.h.s8.bf16 %v318_v26  ;;  %v271_v26 = vld [vmem:[#allocation4 + $0x130] sm:$0xff]  ;;  %v406_v36 = vunpack.c.h.s8.bf16 %v247_v25 }
 0x133   :  { %v453_v35 = vunpack.c.l.s8.bf16 %v271_v26 }
 0x134   :  { %v4448_v57 = vcombine.low %v499_v29, %v547_v30  ;;  %v4450_v58 = vcombine.low %v500_v31, %v548_v32 }
 0x138   :  { %3000 = vmatpush1.bf16.xpose.msra.mxu0 %v4344_v37  ;;  %3040 = vmatpush1.bf16.xpose.msra.mxu1 %v4346_v38  ;;  %v4544_v37 = vcombine.low %v595_v17, %v643_v18  ;;  %v4546_v38 = vcombine.low %v596_v19, %v644_v20  ;;  %v98_v19 = vld [vmem:[#allocation2 + $0x1c8] sm:$0xff]  ;;  %v100_v20 = vld [vmem:[#allocation2 + $0x1d8] sm:$0xff] }
 0x139   :  { %3075 = vmatprep.subr.bf16.mxu0 %v4541_v39  ;;  %3115 = vmatprep.subr.bf16.mxu1 %v4543_v40  ;;  %v4449_v39 = vcombine.high %v499_v29, %v547_v30  ;;  %v4451_v40 = vcombine.high %v500_v31, %v548_v32  ;;  %v194_v27 = vpack.c.bf16 %v98_v19, %v98_v19 }
 0x13a   :  { %v196_v28 = vpack.c.bf16 %v100_v20, %v100_v20 }
 0x13f   :  { %v2379_v61 = vpop.f32.mrf.mxu0  ;;  %v2419_v62 = vpop.f32.mrf.mxu1  ;;  %3018 = vmatmul.mubr.bf16.vlgmr.msra.gmra.mxu0 %v181_v49  ;;  %3058 = vmatmul.mubr.bf16.vlgmr.msra.gmra.mxu1 %v183_v50  ;;  %v403_v50 = vunpack.c.l.s8.bf16 %v246_v41 }
 0x140   :  { %v2380_v63 = vadd.f32 %v2379_v61, %v2340_v22  ;;  %3076 = vmatpush1.bf16.xpose.msra.mxu0 %v4540_v53  ;;  %3116 = vmatpush1.bf16.xpose.msra.mxu1 %v4542_v54  ;;  %v4350_v22 = vcombine.low %v402_v4, %v450_v5  ;;  %v452_v53 = vunpack.c.h.s8.bf16 %v270_v42 }
 0x141   :  { %v2381_v0 = vpop.f32.mrf.mxu0  ;;  %v2421_v1 = vpop.f32.mrf.mxu1  ;;  %3077 = vmatprep.subr.bf16.mxu0 %v4445_v55  ;;  %3117 = vmatprep.subr.bf16.mxu1 %v4447_v56  ;;  %v4353_v61 = vcombine.high %v403_v50, %v451_v51  ;;  %v4352_v5 = vcombine.low %v403_v50, %v451_v51 }
 0x142   :  { %v2420_v6 = vadd.f32 %v2419_v62, %v2380_v63  ;;  %3097 = vmatprep.mubr.bf16.mxu0 %v186_v59  ;;  %3137 = vmatprep.mubr.bf16.mxu1 %v188_v60  ;;  %v4355_v62 = vcombine.high %v404_v52, %v452_v53  ;;  %v343_v63 = vld [vmem:[#allocation4 + $0x370] sm:$0xff] }
 0x143   :  { %v2382_v7 = vpop.f32.mrf.mxu0  ;;  %v2422_v8 = vpop.f32.mrf.mxu1  ;;  %v367_v0 = vld [vmem:[#allocation4 + $0x430] sm:$0xff]  ;;  %v597_v1 = vunpack.c.l.s8.bf16 %v343_v63  ;;  %v598_v3 = vunpack.c.h.s8.bf16 %v343_v63 }
 0x144   :  { %v645_v2 = vunpack.c.l.s8.bf16 %v367_v0  ;;  %v646_v4 = vunpack.c.h.s8.bf16 %v367_v0 }
 0x145   :  { %v2383_v11 = vpop.f32.mrf.mxu0  ;;  %v2423_v12 = vpop.f32.mrf.mxu1 }
 0x146   :  { %v4549_v7 = vcombine.high %v597_v1, %v645_v2  ;;  %v4551_v8 = vcombine.high %v598_v3, %v646_v4  ;;  %v93_v11 = vld [vmem:[#allocation2 + $0x1a0] sm:$0xff]  ;;  %v95_v12 = vld [vmem:[#allocation2 + $0x1b0] sm:$0xff] }
 0x147   :  { %v189_v17 = vpack.c.bf16 %v93_v11, %v93_v11  ;;  %v191_v18 = vpack.c.bf16 %v95_v12, %v95_v12 }
 0x148   :  { %3078 = vmatpush1.bf16.xpose.msra.mxu0 %v4444_v9  ;;  %3118 = vmatpush1.bf16.xpose.msra.mxu1 %v4446_v10  ;;  %v295_v9 = vld [vmem:[#allocation4 + $0x1f0] sm:$0xff] }
 0x149   :  { %3079 = vmatprep.subr.bf16.mxu0 %v4349_v13  ;;  %3119 = vmatprep.subr.bf16.mxu1 %v4351_v14  ;;  %v319_v10 = vld [vmem:[#allocation4 + $0x2b0] sm:$0xff]  ;;  %v501_v13 = vunpack.c.l.s8.bf16 %v295_v9  ;;  %v502_v15 = vunpack.c.h.s8.bf16 %v295_v9  ;;  %v248_v9 = vld [vmem:[#allocation4 + $0x78] sm:$0xff] }
 0x14a   :  { %v549_v14 = vunpack.c.l.s8.bf16 %v319_v10  ;;  %v550_v16 = vunpack.c.h.s8.bf16 %v319_v10  ;;  %v272_v10 = vld [vmem:[#allocation4 + $0x138] sm:$0xff]  ;;  %v408_v20 = vunpack.c.h.s8.bf16 %v248_v9 }
 0x14b   :  { %v455_v19 = vunpack.c.l.s8.bf16 %v272_v10 }
 0x14c   :  { %v4452_v41 = vcombine.low %v501_v13, %v549_v14  ;;  %v4454_v42 = vcombine.low %v502_v15, %v550_v16 }
 0x150   :  { %3080 = vmatpush1.bf16.xpose.msra.mxu0 %v4348_v21  ;;  %3120 = vmatpush1.bf16.xpose.msra.mxu1 %v4350_v22  ;;  %v4548_v21 = vcombine.low %v597_v1, %v645_v2  ;;  %v4550_v22 = vcombine.low %v598_v3, %v646_v4  ;;  %v102_v3 = vld [vmem:[#allocation2 + $0x1e8] sm:$0xff]  ;;  %v104_v4 = vld [vmem:[#allocation2 + $0x1f8] sm:$0xff] }
 0x151   :  { %3155 = vmatprep.subr.bf16.mxu0 %v4545_v23  ;;  %3195 = vmatprep.subr.bf16.mxu1 %v4547_v24  ;;  %v4453_v23 = vcombine.high %v501_v13, %v549_v14  ;;  %v4455_v24 = vcombine.high %v502_v15, %v550_v16  ;;  %v198_v11 = vpack.c.bf16 %v102_v3, %v102_v3 }
 0x152   :  { %v200_v12 = vpack.c.bf16 %v104_v4, %v104_v4 }
 0x157   :  { %v2459_v45 = vpop.f32.mrf.mxu0  ;;  %v2499_v46 = vpop.f32.mrf.mxu1  ;;  %3098 = vmatmul.mubr.bf16.vlgmr.msra.gmra.mxu0 %v185_v33  ;;  %3138 = vmatmul.mubr.bf16.vlgmr.msra.gmra.mxu1 %v187_v34  ;;  %v405_v34 = vunpack.c.l.s8.bf16 %v247_v25 }
 0x158   :  { %v2460_v47 = vadd.f32 %v2459_v45, %v2420_v6  ;;  %3156 = vmatpush1.bf16.xpose.msra.mxu0 %v4544_v37  ;;  %3196 = vmatpush1.bf16.xpose.msra.mxu1 %v4546_v38  ;;  %v4354_v6 = vcombine.low %v404_v52, %v452_v53  ;;  %v454_v37 = vunpack.c.h.s8.bf16 %v271_v26 }
 0x159   :  { %v2461_v48 = vpop.f32.mrf.mxu0  ;;  %v2501_v49 = vpop.f32.mrf.mxu1  ;;  %3157 = vmatprep.subr.bf16.mxu0 %v4449_v39  ;;  %3197 = vmatprep.subr.bf16.mxu1 %v4451_v40  ;;  %v4357_v45 = vcombine.high %v405_v34, %v453_v35  ;;  %v4356_v53 = vcombine.low %v405_v34, %v453_v35 }
 0x15a   :  { %v2500_v54 = vadd.f32 %v2499_v46, %v2460_v47  ;;  %3177 = vmatprep.mubr.bf16.mxu0 %v190_v43  ;;  %3217 = vmatprep.mubr.bf16.mxu1 %v192_v44  ;;  %v4359_v46 = vcombine.high %v406_v36, %v454_v37  ;;  %v344_v47 = vld [vmem:[#allocation4 + $0x378] sm:$0xff] }
 0x15b   :  { %v2462_v55 = vpop.f32.mrf.mxu0  ;;  %v2502_v56 = vpop.f32.mrf.mxu1  ;;  %v368_v48 = vld [vmem:[#allocation4 + $0x438] sm:$0xff]  ;;  %v599_v49 = vunpack.c.l.s8.bf16 %v344_v47  ;;  %v600_v51 = vunpack.c.h.s8.bf16 %v344_v47 }
 0x15c   :  { %v647_v50 = vunpack.c.l.s8.bf16 %v368_v48  ;;  %v648_v52 = vunpack.c.h.s8.bf16 %v368_v48 }
 0x15d   :  { %v2463_v59 = vpop.f32.mrf.mxu0  ;;  %v2503_v60 = vpop.f32.mrf.mxu1 }
 0x15e   :  { %v4553_v55 = vcombine.high %v599_v49, %v647_v50  ;;  %v4555_v56 = vcombine.high %v600_v51, %v648_v52  ;;  %v97_v59 = vld [vmem:[#allocation2 + $0x1c0] sm:$0xff]  ;;  %v99_v60 = vld [vmem:[#allocation2 + $0x1d0] sm:$0xff] }
 0x15f   :  { %v193_v1 = vpack.c.bf16 %v97_v59, %v97_v59  ;;  %v195_v2 = vpack.c.bf16 %v99_v60, %v99_v60 }
 0x160   :  { %3158 = vmatpush1.bf16.xpose.msra.mxu0 %v4448_v57  ;;  %3198 = vmatpush1.bf16.xpose.msra.mxu1 %v4450_v58  ;;  %v296_v57 = vld [vmem:[#allocation4 + $0x1f8] sm:$0xff] }
 0x161   :  { %3159 = vmatprep.subr.bf16.mxu0 %v4353_v61  ;;  %3199 = vmatprep.subr.bf16.mxu1 %v4355_v62  ;;  %v320_v58 = vld [vmem:[#allocation4 + $0x2b8] sm:$0xff]  ;;  %v503_v61 = vunpack.c.l.s8.bf16 %v296_v57  ;;  %v504_v63 = vunpack.c.h.s8.bf16 %v296_v57  ;;  %v249_v57 = vld [vmem:[#allocation4 + $0x80] sm:$0xff] }
 0x162   :  { %v551_v62 = vunpack.c.l.s8.bf16 %v320_v58  ;;  %v552_v0 = vunpack.c.h.s8.bf16 %v320_v58  ;;  %v273_v58 = vld [vmem:[#allocation4 + $0x140] sm:$0xff]  ;;  %v410_v4 = vunpack.c.h.s8.bf16 %v249_v57 }
 0x163   :  { %v457_v3 = vunpack.c.l.s8.bf16 %v273_v58 }
 0x164   :  { %v4456_v25 = vcombine.low %v503_v61, %v551_v62  ;;  %v4458_v26 = vcombine.low %v504_v63, %v552_v0 }
 0x168   :  { %3160 = vmatpush1.bf16.xpose.msra.mxu0 %v4352_v5  ;;  %3200 = vmatpush1.bf16.xpose.msra.mxu1 %v4354_v6  ;;  %v4552_v5 = vcombine.low %v599_v49, %v647_v50  ;;  %v4554_v6 = vcombine.low %v600_v51, %v648_v52  ;;  %v106_v51 = vld [vmem:[#allocation2 + $0x208] sm:$0xff]  ;;  %v108_v52 = vld [vmem:[#allocation2 + $0x218] sm:$0xff] }
 0x169   :  { %3235 = vmatprep.subr.bf16.mxu0 %v4549_v7  ;;  %3275 = vmatprep.subr.bf16.mxu1 %v4551_v8  ;;  %v4457_v7 = vcombine.high %v503_v61, %v551_v62  ;;  %v4459_v8 = vcombine.high %v504_v63, %v552_v0  ;;  %v202_v59 = vpack.c.bf16 %v106_v51, %v106_v51 }
 0x16a   :  { %v204_v60 = vpack.c.bf16 %v108_v52, %v108_v52 }
 0x16f   :  { %v2539_v29 = vpop.f32.mrf.mxu0  ;;  %v2579_v30 = vpop.f32.mrf.mxu1  ;;  %3178 = vmatmul.mubr.bf16.vlgmr.msra.gmra.mxu0 %v189_v17  ;;  %3218 = vmatmul.mubr.bf16.vlgmr.msra.gmra.mxu1 %v191_v18  ;;  %v407_v18 = vunpack.c.l.s8.bf16 %v248_v9 }
 0x170   :  { %v2540_v31 = vadd.f32 %v2539_v29, %v2500_v54  ;;  %3236 = vmatpush1.bf16.xpose.msra.mxu0 %v4548_v21  ;;  %3276 = vmatpush1.bf16.xpose.msra.mxu1 %v4550_v22  ;;  %v4358_v54 = vcombine.low %v406_v36, %v454_v37  ;;  %v456_v21 = vunpack.c.h.s8.bf16 %v272_v10 }
 0x171   :  { %v2541_v32 = vpop.f32.mrf.mxu0  ;;  %v2581_v33 = vpop.f32.mrf.mxu1  ;;  %3237 = vmatprep.subr.bf16.mxu0 %v4453_v23  ;;  %3277 = vmatprep.subr.bf16.mxu1 %v4455_v24  ;;  %v4361_v29 = vcombine.high %v407_v18, %v455_v19  ;;  %v4360_v37 = vcombine.low %v407_v18, %v455_v19 }
 0x172   :  { %v2580_v38 = vadd.f32 %v2579_v30, %v2540_v31  ;;  %3257 = vmatprep.mubr.bf16.mxu0 %v194_v27  ;;  %3297 = vmatprep.mubr.bf16.mxu1 %v196_v28  ;;  %v4363_v30 = vcombine.high %v408_v20, %v456_v21  ;;  %v345_v31 = vld [vmem:[#allocation4 + $0x380] sm:$0xff] }
 0x173   :  { %v2542_v39 = vpop.f32.mrf.mxu0  ;;  %v2582_v40 = vpop.f32.mrf.mxu1  ;;  %v369_v32 = vld [vmem:[#allocation4 + $0x440] sm:$0xff]  ;;  %v601_v33 = vunpack.c.l.s8.bf16 %v345_v31  ;;  %v602_v35 = vunpack.c.h.s8.bf16 %v345_v31 }
 0x174   :  { %v649_v34 = vunpack.c.l.s8.bf16 %v369_v32  ;;  %v650_v36 = vunpack.c.h.s8.bf16 %v369_v32 }
 0x175   :  { %v2543_v43 = vpop.f32.mrf.mxu0  ;;  %v2583_v44 = vpop.f32.mrf.mxu1 }
 0x176   :  { %v4557_v39 = vcombine.high %v601_v33, %v649_v34  ;;  %v4559_v40 = vcombine.high %v602_v35, %v650_v36  ;;  %v101_v43 = vld [vmem:[#allocation2 + $0x1e0] sm:$0xff]  ;;  %v103_v44 = vld [vmem:[#allocation2 + $0x1f0] sm:$0xff] }
 0x177   :  { %v197_v49 = vpack.c.bf16 %v101_v43, %v101_v43  ;;  %v199_v50 = vpack.c.bf16 %v103_v44, %v103_v44 }
 0x178   :  { %3238 = vmatpush1.bf16.xpose.msra.mxu0 %v4452_v41  ;;  %3278 = vmatpush1.bf16.xpose.msra.mxu1 %v4454_v42  ;;  %v297_v41 = vld [vmem:[#allocation4 + $0x200] sm:$0xff] }
 0x179   :  { %3239 = vmatprep.subr.bf16.mxu0 %v4357_v45  ;;  %3279 = vmatprep.subr.bf16.mxu1 %v4359_v46  ;;  %v321_v42 = vld [vmem:[#allocation4 + $0x2c0] sm:$0xff]  ;;  %v505_v45 = vunpack.c.l.s8.bf16 %v297_v41  ;;  %v506_v47 = vunpack.c.h.s8.bf16 %v297_v41  ;;  %v250_v41 = vld [vmem:[#allocation4 + $0x88] sm:$0xff] }
 0x17a   :  { %v553_v46 = vunpack.c.l.s8.bf16 %v321_v42  ;;  %v554_v48 = vunpack.c.h.s8.bf16 %v321_v42  ;;  %v274_v42 = vld [vmem:[#allocation4 + $0x148] sm:$0xff]  ;;  %v412_v52 = vunpack.c.h.s8.bf16 %v250_v41 }
 0x17b   :  { %v459_v51 = vunpack.c.l.s8.bf16 %v274_v42 }
 0x17c   :  { %v4460_v9 = vcombine.low %v505_v45, %v553_v46  ;;  %v4462_v10 = vcombine.low %v506_v47, %v554_v48 }
 0x180   :  { %3240 = vmatpush1.bf16.xpose.msra.mxu0 %v4356_v53  ;;  %3280 = vmatpush1.bf16.xpose.msra.mxu1 %v4358_v54  ;;  %v4556_v53 = vcombine.low %v601_v33, %v649_v34  ;;  %v4558_v54 = vcombine.low %v602_v35, %v650_v36  ;;  %v110_v35 = vld [vmem:[#allocation2 + $0x228] sm:$0xff]  ;;  %v112_v36 = vld [vmem:[#allocation2 + $0x238] sm:$0xff] }
 0x181   :  { %3315 = vmatprep.subr.bf16.mxu0 %v4553_v55  ;;  %3355 = vmatprep.subr.bf16.mxu1 %v4555_v56  ;;  %v4461_v55 = vcombine.high %v505_v45, %v553_v46  ;;  %v4463_v56 = vcombine.high %v506_v47, %v554_v48  ;;  %v206_v43 = vpack.c.bf16 %v110_v35, %v110_v35 }
 0x182   :  { %v208_v44 = vpack.c.bf16 %v112_v36, %v112_v36 }
 0x187   :  { %v2619_v13 = vpop.f32.mrf.mxu0  ;;  %v2659_v14 = vpop.f32.mrf.mxu1  ;;  %3258 = vmatmul.mubr.bf16.vlgmr.msra.gmra.mxu0 %v193_v1  ;;  %3298 = vmatmul.mubr.bf16.vlgmr.msra.gmra.mxu1 %v195_v2  ;;  %v409_v2 = vunpack.c.l.s8.bf16 %v249_v57 }
 0x188   :  { %v2620_v15 = vadd.f32 %v2619_v13, %v2580_v38  ;;  %3316 = vmatpush1.bf16.xpose.msra.mxu0 %v4552_v5  ;;  %3356 = vmatpush1.bf16.xpose.msra.mxu1 %v4554_v6  ;;  %v4362_v38 = vcombine.low %v408_v20, %v456_v21  ;;  %v458_v5 = vunpack.c.h.s8.bf16 %v273_v58 }
 0x189   :  { %v2621_v16 = vpop.f32.mrf.mxu0  ;;  %v2661_v17 = vpop.f32.mrf.mxu1  ;;  %3317 = vmatprep.subr.bf16.mxu0 %v4457_v7  ;;  %3357 = vmatprep.subr.bf16.mxu1 %v4459_v8  ;;  %v4365_v13 = vcombine.high %v409_v2, %v457_v3  ;;  %v4364_v21 = vcombine.low %v409_v2, %v457_v3 }
 0x18a   :  { %v2660_v22 = vadd.f32 %v2659_v14, %v2620_v15  ;;  %3337 = vmatprep.mubr.bf16.mxu0 %v198_v11  ;;  %3377 = vmatprep.mubr.bf16.mxu1 %v200_v12  ;;  %v4367_v14 = vcombine.high %v410_v4, %v458_v5  ;;  %v346_v15 = vld [vmem:[#allocation4 + $0x388] sm:$0xff] }
 0x18b   :  { %v2622_v23 = vpop.f32.mrf.mxu0  ;;  %v2662_v24 = vpop.f32.mrf.mxu1  ;;  %v370_v16 = vld [vmem:[#allocation4 + $0x448] sm:$0xff]  ;;  %v603_v17 = vunpack.c.l.s8.bf16 %v346_v15  ;;  %v604_v19 = vunpack.c.h.s8.bf16 %v346_v15 }
 0x18c   :  { %v651_v18 = vunpack.c.l.s8.bf16 %v370_v16  ;;  %v652_v20 = vunpack.c.h.s8.bf16 %v370_v16 }
 0x18d   :  { %v2623_v27 = vpop.f32.mrf.mxu0  ;;  %v2663_v28 = vpop.f32.mrf.mxu1 }
 0x18e   :  { %v4561_v23 = vcombine.high %v603_v17, %v651_v18  ;;  %v4563_v24 = vcombine.high %v604_v19, %v652_v20  ;;  %v105_v27 = vld [vmem:[#allocation2 + $0x200] sm:$0xff]  ;;  %v107_v28 = vld [vmem:[#allocation2 + $0x210] sm:$0xff] }
 0x18f   :  { %v201_v33 = vpack.c.bf16 %v105_v27, %v105_v27  ;;  %v203_v34 = vpack.c.bf16 %v107_v28, %v107_v28 }
 0x190   :  { %3318 = vmatpush1.bf16.xpose.msra.mxu0 %v4456_v25  ;;  %3358 = vmatpush1.bf16.xpose.msra.mxu1 %v4458_v26  ;;  %v298_v25 = vld [vmem:[#allocation4 + $0x208] sm:$0xff] }
 0x191   :  { %3319 = vmatprep.subr.bf16.mxu0 %v4361_v29  ;;  %3359 = vmatprep.subr.bf16.mxu1 %v4363_v30  ;;  %v322_v26 = vld [vmem:[#allocation4 + $0x2c8] sm:$0xff]  ;;  %v507_v29 = vunpack.c.l.s8.bf16 %v298_v25  ;;  %v508_v31 = vunpack.c.h.s8.bf16 %v298_v25  ;;  %v251_v25 = vld [vmem:[#allocation4 + $0x90] sm:$0xff] }
 0x192   :  { %v555_v30 = vunpack.c.l.s8.bf16 %v322_v26  ;;  %v556_v32 = vunpack.c.h.s8.bf16 %v322_v26  ;;  %v275_v26 = vld [vmem:[#allocation4 + $0x150] sm:$0xff]  ;;  %v414_v36 = vunpack.c.h.s8.bf16 %v251_v25 }
 0x193   :  { %v461_v35 = vunpack.c.l.s8.bf16 %v275_v26 }
 0x194   :  { %v4464_v57 = vcombine.low %v507_v29, %v555_v30  ;;  %v4466_v58 = vcombine.low %v508_v31, %v556_v32 }
 0x198   :  { %3320 = vmatpush1.bf16.xpose.msra.mxu0 %v4360_v37  ;;  %3360 = vmatpush1.bf16.xpose.msra.mxu1 %v4362_v38  ;;  %v4560_v37 = vcombine.low %v603_v17, %v651_v18  ;;  %v4562_v38 = vcombine.low %v604_v19, %v652_v20  ;;  %v114_v19 = vld [vmem:[#allocation2 + $0x248] sm:$0xff]  ;;  %v116_v20 = vld [vmem:[#allocation2 + $0x258] sm:$0xff] }
 0x199   :  { %3395 = vmatprep.subr.bf16.mxu0 %v4557_v39  ;;  %3435 = vmatprep.subr.bf16.mxu1 %v4559_v40  ;;  %v4465_v39 = vcombine.high %v507_v29, %v555_v30  ;;  %v4467_v40 = vcombine.high %v508_v31, %v556_v32  ;;  %v210_v27 = vpack.c.bf16 %v114_v19, %v114_v19 }
 0x19a   :  { %v212_v28 = vpack.c.bf16 %v116_v20, %v116_v20 }
 0x19f   :  { %v2699_v61 = vpop.f32.mrf.mxu0  ;;  %v2739_v62 = vpop.f32.mrf.mxu1  ;;  %3338 = vmatmul.mubr.bf16.vlgmr.msra.gmra.mxu0 %v197_v49  ;;  %3378 = vmatmul.mubr.bf16.vlgmr.msra.gmra.mxu1 %v199_v50  ;;  %v411_v50 = vunpack.c.l.s8.bf16 %v250_v41 }
 0x1a0   :  { %v2700_v63 = vadd.f32 %v2699_v61, %v2660_v22  ;;  %3396 = vmatpush1.bf16.xpose.msra.mxu0 %v4556_v53  ;;  %3436 = vmatpush1.bf16.xpose.msra.mxu1 %v4558_v54  ;;  %v4366_v22 = vcombine.low %v410_v4, %v458_v5  ;;  %v460_v53 = vunpack.c.h.s8.bf16 %v274_v42 }
 0x1a1   :  { %v2701_v0 = vpop.f32.mrf.mxu0  ;;  %v2741_v1 = vpop.f32.mrf.mxu1  ;;  %3397 = vmatprep.subr.bf16.mxu0 %v4461_v55  ;;  %3437 = vmatprep.subr.bf16.mxu1 %v4463_v56  ;;  %v4369_v61 = vcombine.high %v411_v50, %v459_v51  ;;  %v4368_v5 = vcombine.low %v411_v50, %v459_v51 }
 0x1a2   :  { %v2740_v6 = vadd.f32 %v2739_v62, %v2700_v63  ;;  %3417 = vmatprep.mubr.bf16.mxu0 %v202_v59  ;;  %3457 = vmatprep.mubr.bf16.mxu1 %v204_v60  ;;  %v4371_v62 = vcombine.high %v412_v52, %v460_v53  ;;  %v347_v63 = vld [vmem:[#allocation4 + $0x390] sm:$0xff] }
 0x1a3   :  { %v2702_v7 = vpop.f32.mrf.mxu0  ;;  %v2742_v8 = vpop.f32.mrf.mxu1  ;;  %v371_v0 = vld [vmem:[#allocation4 + $0x450] sm:$0xff]  ;;  %v605_v1 = vunpack.c.l.s8.bf16 %v347_v63  ;;  %v606_v3 = vunpack.c.h.s8.bf16 %v347_v63 }
 0x1a4   :  { %v653_v2 = vunpack.c.l.s8.bf16 %v371_v0  ;;  %v654_v4 = vunpack.c.h.s8.bf16 %v371_v0 }
 0x1a5   :  { %v2703_v11 = vpop.f32.mrf.mxu0  ;;  %v2743_v12 = vpop.f32.mrf.mxu1 }
 0x1a6   :  { %v4565_v7 = vcombine.high %v605_v1, %v653_v2  ;;  %v4567_v8 = vcombine.high %v606_v3, %v654_v4  ;;  %v109_v11 = vld [vmem:[#allocation2 + $0x220] sm:$0xff]  ;;  %v111_v12 = vld [vmem:[#allocation2 + $0x230] sm:$0xff] }
 0x1a7   :  { %v205_v17 = vpack.c.bf16 %v109_v11, %v109_v11  ;;  %v207_v18 = vpack.c.bf16 %v111_v12, %v111_v12 }
 0x1a8   :  { %3398 = vmatpush1.bf16.xpose.msra.mxu0 %v4460_v9  ;;  %3438 = vmatpush1.bf16.xpose.msra.mxu1 %v4462_v10  ;;  %v299_v9 = vld [vmem:[#allocation4 + $0x210] sm:$0xff] }
 0x1a9   :  { %3399 = vmatprep.subr.bf16.mxu0 %v4365_v13  ;;  %3439 = vmatprep.subr.bf16.mxu1 %v4367_v14  ;;  %v323_v10 = vld [vmem:[#allocation4 + $0x2d0] sm:$0xff]  ;;  %v509_v13 = vunpack.c.l.s8.bf16 %v299_v9  ;;  %v510_v15 = vunpack.c.h.s8.bf16 %v299_v9  ;;  %v252_v9 = vld [vmem:[#allocation4 + $0x98] sm:$0xff] }
 0x1aa   :  { %v557_v14 = vunpack.c.l.s8.bf16 %v323_v10  ;;  %v558_v16 = vunpack.c.h.s8.bf16 %v323_v10  ;;  %v276_v10 = vld [vmem:[#allocation4 + $0x158] sm:$0xff]  ;;  %v416_v20 = vunpack.c.h.s8.bf16 %v252_v9 }
 0x1ab   :  { %v463_v19 = vunpack.c.l.s8.bf16 %v276_v10 }
 0x1ac   :  { %v4468_v41 = vcombine.low %v509_v13, %v557_v14  ;;  %v4470_v42 = vcombine.low %v510_v15, %v558_v16 }
 0x1b0   :  { %3400 = vmatpush1.bf16.xpose.msra.mxu0 %v4364_v21  ;;  %3440 = vmatpush1.bf16.xpose.msra.mxu1 %v4366_v22  ;;  %v4564_v21 = vcombine.low %v605_v1, %v653_v2  ;;  %v4566_v22 = vcombine.low %v606_v3, %v654_v4  ;;  %v118_v3 = vld [vmem:[#allocation2 + $0x268] sm:$0xff]  ;;  %v120_v4 = vld [vmem:[#allocation2 + $0x278] sm:$0xff] }
 0x1b1   :  { %3475 = vmatprep.subr.bf16.mxu0 %v4561_v23  ;;  %3515 = vmatprep.subr.bf16.mxu1 %v4563_v24  ;;  %v4469_v23 = vcombine.high %v509_v13, %v557_v14  ;;  %v4471_v24 = vcombine.high %v510_v15, %v558_v16  ;;  %v214_v11 = vpack.c.bf16 %v118_v3, %v118_v3 }
 0x1b2   :  { %v216_v12 = vpack.c.bf16 %v120_v4, %v120_v4 }
 0x1b7   :  { %v2779_v45 = vpop.f32.mrf.mxu0  ;;  %v2819_v46 = vpop.f32.mrf.mxu1  ;;  %3418 = vmatmul.mubr.bf16.vlgmr.msra.gmra.mxu0 %v201_v33  ;;  %3458 = vmatmul.mubr.bf16.vlgmr.msra.gmra.mxu1 %v203_v34  ;;  %v413_v34 = vunpack.c.l.s8.bf16 %v251_v25 }
 0x1b8   :  { %v2780_v47 = vadd.f32 %v2779_v45, %v2740_v6  ;;  %3476 = vmatpush1.bf16.xpose.msra.mxu0 %v4560_v37  ;;  %3516 = vmatpush1.bf16.xpose.msra.mxu1 %v4562_v38  ;;  %v4370_v6 = vcombine.low %v412_v52, %v460_v53  ;;  %v462_v37 = vunpack.c.h.s8.bf16 %v275_v26 }
 0x1b9   :  { %v2781_v48 = vpop.f32.mrf.mxu0  ;;  %v2821_v49 = vpop.f32.mrf.mxu1  ;;  %3477 = vmatprep.subr.bf16.mxu0 %v4465_v39  ;;  %3517 = vmatprep.subr.bf16.mxu1 %v4467_v40  ;;  %v4373_v45 = vcombine.high %v413_v34, %v461_v35  ;;  %v4372_v53 = vcombine.low %v413_v34, %v461_v35 }
 0x1ba   :  { %v2820_v54 = vadd.f32 %v2819_v46, %v2780_v47  ;;  %3497 = vmatprep.mubr.bf16.mxu0 %v206_v43  ;;  %3537 = vmatprep.mubr.bf16.mxu1 %v208_v44  ;;  %v4375_v46 = vcombine.high %v414_v36, %v462_v37  ;;  %v348_v47 = vld [vmem:[#allocation4 + $0x398] sm:$0xff] }
 0x1bb   :  { %v2782_v55 = vpop.f32.mrf.mxu0  ;;  %v2822_v56 = vpop.f32.mrf.mxu1  ;;  %v372_v48 = vld [vmem:[#allocation4 + $0x458] sm:$0xff]  ;;  %v607_v49 = vunpack.c.l.s8.bf16 %v348_v47  ;;  %v608_v51 = vunpack.c.h.s8.bf16 %v348_v47 }
 0x1bc   :  { %v655_v50 = vunpack.c.l.s8.bf16 %v372_v48  ;;  %v656_v52 = vunpack.c.h.s8.bf16 %v372_v48 }
 0x1bd   :  { %v2783_v59 = vpop.f32.mrf.mxu0  ;;  %v2823_v60 = vpop.f32.mrf.mxu1 }
 0x1be   :  { %v4569_v55 = vcombine.high %v607_v49, %v655_v50  ;;  %v4571_v56 = vcombine.high %v608_v51, %v656_v52  ;;  %v113_v59 = vld [vmem:[#allocation2 + $0x240] sm:$0xff]  ;;  %v115_v60 = vld [vmem:[#allocation2 + $0x250] sm:$0xff] }
 0x1bf   :  { %v209_v1 = vpack.c.bf16 %v113_v59, %v113_v59  ;;  %v211_v2 = vpack.c.bf16 %v115_v60, %v115_v60 }
 0x1c0   :  { %3478 = vmatpush1.bf16.xpose.msra.mxu0 %v4464_v57  ;;  %3518 = vmatpush1.bf16.xpose.msra.mxu1 %v4466_v58  ;;  %v300_v57 = vld [vmem:[#allocation4 + $0x218] sm:$0xff] }
 0x1c1   :  { %3479 = vmatprep.subr.bf16.mxu0 %v4369_v61  ;;  %3519 = vmatprep.subr.bf16.mxu1 %v4371_v62  ;;  %v324_v58 = vld [vmem:[#allocation4 + $0x2d8] sm:$0xff]  ;;  %v511_v61 = vunpack.c.l.s8.bf16 %v300_v57  ;;  %v512_v63 = vunpack.c.h.s8.bf16 %v300_v57  ;;  %v253_v57 = vld [vmem:[#allocation4 + $0xa0] sm:$0xff] }
 0x1c2   :  { %v559_v62 = vunpack.c.l.s8.bf16 %v324_v58  ;;  %v560_v0 = vunpack.c.h.s8.bf16 %v324_v58  ;;  %v277_v58 = vld [vmem:[#allocation4 + $0x160] sm:$0xff]  ;;  %v418_v4 = vunpack.c.h.s8.bf16 %v253_v57 }
 0x1c3   :  { %v465_v3 = vunpack.c.l.s8.bf16 %v277_v58 }
 0x1c4   :  { %v4472_v25 = vcombine.low %v511_v61, %v559_v62  ;;  %v4474_v26 = vcombine.low %v512_v63, %v560_v0 }
 0x1c8   :  { %3480 = vmatpush1.bf16.xpose.msra.mxu0 %v4368_v5  ;;  %3520 = vmatpush1.bf16.xpose.msra.mxu1 %v4370_v6  ;;  %v4568_v5 = vcombine.low %v607_v49, %v655_v50  ;;  %v4570_v6 = vcombine.low %v608_v51, %v656_v52  ;;  %v122_v51 = vld [vmem:[#allocation2 + $0x288] sm:$0xff]  ;;  %v124_v52 = vld [vmem:[#allocation2 + $0x298] sm:$0xff] }
 0x1c9   :  { %3555 = vmatprep.subr.bf16.mxu0 %v4565_v7  ;;  %3595 = vmatprep.subr.bf16.mxu1 %v4567_v8  ;;  %v4473_v7 = vcombine.high %v511_v61, %v559_v62  ;;  %v4475_v8 = vcombine.high %v512_v63, %v560_v0  ;;  %v218_v59 = vpack.c.bf16 %v122_v51, %v122_v51 }
 0x1ca   :  { %v220_v60 = vpack.c.bf16 %v124_v52, %v124_v52 }
 0x1cf   :  { %v2859_v29 = vpop.f32.mrf.mxu0  ;;  %v2899_v30 = vpop.f32.mrf.mxu1  ;;  %3498 = vmatmul.mubr.bf16.vlgmr.msra.gmra.mxu0 %v205_v17  ;;  %3538 = vmatmul.mubr.bf16.vlgmr.msra.gmra.mxu1 %v207_v18  ;;  %v415_v18 = vunpack.c.l.s8.bf16 %v252_v9 }
 0x1d0   :  { %v2860_v31 = vadd.f32 %v2859_v29, %v2820_v54  ;;  %3556 = vmatpush1.bf16.xpose.msra.mxu0 %v4564_v21  ;;  %3596 = vmatpush1.bf16.xpose.msra.mxu1 %v4566_v22  ;;  %v4374_v54 = vcombine.low %v414_v36, %v462_v37  ;;  %v464_v21 = vunpack.c.h.s8.bf16 %v276_v10 }
 0x1d1   :  { %v2861_v32 = vpop.f32.mrf.mxu0  ;;  %v2901_v33 = vpop.f32.mrf.mxu1  ;;  %3557 = vmatprep.subr.bf16.mxu0 %v4469_v23  ;;  %3597 = vmatprep.subr.bf16.mxu1 %v4471_v24  ;;  %v4377_v29 = vcombine.high %v415_v18, %v463_v19  ;;  %v4376_v37 = vcombine.low %v415_v18, %v463_v19 }
 0x1d2   :  { %v2900_v38 = vadd.f32 %v2899_v30, %v2860_v31  ;;  %3577 = vmatprep.mubr.bf16.mxu0 %v210_v27  ;;  %3617 = vmatprep.mubr.bf16.mxu1 %v212_v28  ;;  %v4379_v30 = vcombine.high %v416_v20, %v464_v21  ;;  %v349_v31 = vld [vmem:[#allocation4 + $0x3a0] sm:$0xff] }
 0x1d3   :  { %v2862_v39 = vpop.f32.mrf.mxu0  ;;  %v2902_v40 = vpop.f32.mrf.mxu1  ;;  %v373_v32 = vld [vmem:[#allocation4 + $0x460] sm:$0xff]  ;;  %v609_v33 = vunpack.c.l.s8.bf16 %v349_v31  ;;  %v610_v35 = vunpack.c.h.s8.bf16 %v349_v31 }
 0x1d4   :  { %v657_v34 = vunpack.c.l.s8.bf16 %v373_v32  ;;  %v658_v36 = vunpack.c.h.s8.bf16 %v373_v32 }
 0x1d5   :  { %v2863_v43 = vpop.f32.mrf.mxu0  ;;  %v2903_v44 = vpop.f32.mrf.mxu1 }
 0x1d6   :  { %v4573_v39 = vcombine.high %v609_v33, %v657_v34  ;;  %v4575_v40 = vcombine.high %v610_v35, %v658_v36  ;;  %v117_v43 = vld [vmem:[#allocation2 + $0x260] sm:$0xff]  ;;  %v119_v44 = vld [vmem:[#allocation2 + $0x270] sm:$0xff] }
 0x1d7   :  { %v213_v49 = vpack.c.bf16 %v117_v43, %v117_v43  ;;  %v215_v50 = vpack.c.bf16 %v119_v44, %v119_v44 }
 0x1d8   :  { %3558 = vmatpush1.bf16.xpose.msra.mxu0 %v4468_v41  ;;  %3598 = vmatpush1.bf16.xpose.msra.mxu1 %v4470_v42  ;;  %v301_v41 = vld [vmem:[#allocation4 + $0x220] sm:$0xff] }
 0x1d9   :  { %3559 = vmatprep.subr.bf16.mxu0 %v4373_v45  ;;  %3599 = vmatprep.subr.bf16.mxu1 %v4375_v46  ;;  %v325_v42 = vld [vmem:[#allocation4 + $0x2e0] sm:$0xff]  ;;  %v513_v45 = vunpack.c.l.s8.bf16 %v301_v41  ;;  %v514_v47 = vunpack.c.h.s8.bf16 %v301_v41  ;;  %v254_v41 = vld [vmem:[#allocation4 + $0xa8] sm:$0xff] }
 0x1da   :  { %v561_v46 = vunpack.c.l.s8.bf16 %v325_v42  ;;  %v562_v48 = vunpack.c.h.s8.bf16 %v325_v42  ;;  %v278_v42 = vld [vmem:[#allocation4 + $0x168] sm:$0xff]  ;;  %v420_v52 = vunpack.c.h.s8.bf16 %v254_v41 }
 0x1db   :  { %v467_v51 = vunpack.c.l.s8.bf16 %v278_v42 }
 0x1dc   :  { %v4476_v9 = vcombine.low %v513_v45, %v561_v46  ;;  %v4478_v10 = vcombine.low %v514_v47, %v562_v48 }
 0x1e0   :  { %3560 = vmatpush1.bf16.xpose.msra.mxu0 %v4372_v53  ;;  %3600 = vmatpush1.bf16.xpose.msra.mxu1 %v4374_v54  ;;  %v4572_v53 = vcombine.low %v609_v33, %v657_v34  ;;  %v4574_v54 = vcombine.low %v610_v35, %v658_v36  ;;  %v126_v35 = vld [vmem:[#allocation2 + $0x2a8] sm:$0xff]  ;;  %v128_v36 = vld [vmem:[#allocation2 + $0x2b8] sm:$0xff] }
 0x1e1   :  { %3635 = vmatprep.subr.bf16.mxu0 %v4569_v55  ;;  %3675 = vmatprep.subr.bf16.mxu1 %v4571_v56  ;;  %v4477_v55 = vcombine.high %v513_v45, %v561_v46  ;;  %v4479_v56 = vcombine.high %v514_v47, %v562_v48  ;;  %v222_v43 = vpack.c.bf16 %v126_v35, %v126_v35 }
 0x1e2   :  { %v224_v44 = vpack.c.bf16 %v128_v36, %v128_v36 }
 0x1e7   :  { %v2939_v13 = vpop.f32.mrf.mxu0  ;;  %v2979_v14 = vpop.f32.mrf.mxu1  ;;  %3578 = vmatmul.mubr.bf16.vlgmr.msra.gmra.mxu0 %v209_v1  ;;  %3618 = vmatmul.mubr.bf16.vlgmr.msra.gmra.mxu1 %v211_v2  ;;  %v417_v2 = vunpack.c.l.s8.bf16 %v253_v57 }
 0x1e8   :  { %v2940_v15 = vadd.f32 %v2939_v13, %v2900_v38  ;;  %3636 = vmatpush1.bf16.xpose.msra.mxu0 %v4568_v5  ;;  %3676 = vmatpush1.bf16.xpose.msra.mxu1 %v4570_v6  ;;  %v4378_v38 = vcombine.low %v416_v20, %v464_v21  ;;  %v466_v5 = vunpack.c.h.s8.bf16 %v277_v58 }
 0x1e9   :  { %v2941_v16 = vpop.f32.mrf.mxu0  ;;  %v2981_v17 = vpop.f32.mrf.mxu1  ;;  %3637 = vmatprep.subr.bf16.mxu0 %v4473_v7  ;;  %3677 = vmatprep.subr.bf16.mxu1 %v4475_v8  ;;  %v4381_v13 = vcombine.high %v417_v2, %v465_v3  ;;  %v4380_v21 = vcombine.low %v417_v2, %v465_v3 }
 0x1ea   :  { %v2980_v22 = vadd.f32 %v2979_v14, %v2940_v15  ;;  %3657 = vmatprep.mubr.bf16.mxu0 %v214_v11  ;;  %3697 = vmatprep.mubr.bf16.mxu1 %v216_v12  ;;  %v4383_v14 = vcombine.high %v418_v4, %v466_v5  ;;  %v350_v15 = vld [vmem:[#allocation4 + $0x3a8] sm:$0xff] }
 0x1eb   :  { %v2942_v23 = vpop.f32.mrf.mxu0  ;;  %v2982_v24 = vpop.f32.mrf.mxu1  ;;  %v374_v16 = vld [vmem:[#allocation4 + $0x468] sm:$0xff]  ;;  %v611_v17 = vunpack.c.l.s8.bf16 %v350_v15  ;;  %v612_v19 = vunpack.c.h.s8.bf16 %v350_v15 }
 0x1ec   :  { %v659_v18 = vunpack.c.l.s8.bf16 %v374_v16  ;;  %v660_v20 = vunpack.c.h.s8.bf16 %v374_v16 }
 0x1ed   :  { %v2943_v27 = vpop.f32.mrf.mxu0  ;;  %v2983_v28 = vpop.f32.mrf.mxu1 }
 0x1ee   :  { %v4577_v23 = vcombine.high %v611_v17, %v659_v18  ;;  %v4579_v24 = vcombine.high %v612_v19, %v660_v20  ;;  %v121_v27 = vld [vmem:[#allocation2 + $0x280] sm:$0xff]  ;;  %v123_v28 = vld [vmem:[#allocation2 + $0x290] sm:$0xff] }
 0x1ef   :  { %v217_v33 = vpack.c.bf16 %v121_v27, %v121_v27  ;;  %v219_v34 = vpack.c.bf16 %v123_v28, %v123_v28 }
 0x1f0   :  { %3638 = vmatpush1.bf16.xpose.msra.mxu0 %v4472_v25  ;;  %3678 = vmatpush1.bf16.xpose.msra.mxu1 %v4474_v26  ;;  %v302_v25 = vld [vmem:[#allocation4 + $0x228] sm:$0xff] }
 0x1f1   :  { %3639 = vmatprep.subr.bf16.mxu0 %v4377_v29  ;;  %3679 = vmatprep.subr.bf16.mxu1 %v4379_v30  ;;  %v326_v26 = vld [vmem:[#allocation4 + $0x2e8] sm:$0xff]  ;;  %v515_v29 = vunpack.c.l.s8.bf16 %v302_v25  ;;  %v516_v31 = vunpack.c.h.s8.bf16 %v302_v25  ;;  %v255_v25 = vld [vmem:[#allocation4 + $0xb0] sm:$0xff] }
 0x1f2   :  { %v563_v30 = vunpack.c.l.s8.bf16 %v326_v26  ;;  %v564_v32 = vunpack.c.h.s8.bf16 %v326_v26  ;;  %v279_v26 = vld [vmem:[#allocation4 + $0x170] sm:$0xff]  ;;  %v422_v36 = vunpack.c.h.s8.bf16 %v255_v25 }
 0x1f3   :  { %v469_v35 = vunpack.c.l.s8.bf16 %v279_v26 }
 0x1f4   :  { %v4480_v57 = vcombine.low %v515_v29, %v563_v30  ;;  %v4482_v58 = vcombine.low %v516_v31, %v564_v32 }
 0x1f8   :  { %3640 = vmatpush1.bf16.xpose.msra.mxu0 %v4376_v37  ;;  %3680 = vmatpush1.bf16.xpose.msra.mxu1 %v4378_v38  ;;  %v4576_v37 = vcombine.low %v611_v17, %v659_v18  ;;  %v4578_v38 = vcombine.low %v612_v19, %v660_v20  ;;  %v130_v19 = vld [vmem:[#allocation2 + $0x2c8] sm:$0xff]  ;;  %v132_v20 = vld [vmem:[#allocation2 + $0x2d8] sm:$0xff] }
 0x1f9   :  { %3715 = vmatprep.subr.bf16.mxu0 %v4573_v39  ;;  %3755 = vmatprep.subr.bf16.mxu1 %v4575_v40  ;;  %v4481_v39 = vcombine.high %v515_v29, %v563_v30  ;;  %v4483_v40 = vcombine.high %v516_v31, %v564_v32  ;;  %v226_v27 = vpack.c.bf16 %v130_v19, %v130_v19 }
 0x1fa   :  { %v228_v28 = vpack.c.bf16 %v132_v20, %v132_v20 }
 0x1ff   :  { %v3019_v61 = vpop.f32.mrf.mxu0  ;;  %v3059_v62 = vpop.f32.mrf.mxu1  ;;  %3658 = vmatmul.mubr.bf16.vlgmr.msra.gmra.mxu0 %v213_v49  ;;  %3698 = vmatmul.mubr.bf16.vlgmr.msra.gmra.mxu1 %v215_v50  ;;  %v419_v50 = vunpack.c.l.s8.bf16 %v254_v41 }
 0x200   :  { %v3020_v63 = vadd.f32 %v3019_v61, %v2980_v22  ;;  %3716 = vmatpush1.bf16.xpose.msra.mxu0 %v4572_v53  ;;  %3756 = vmatpush1.bf16.xpose.msra.mxu1 %v4574_v54  ;;  %v4382_v22 = vcombine.low %v418_v4, %v466_v5  ;;  %v468_v53 = vunpack.c.h.s8.bf16 %v278_v42 }
 0x201   :  { %v3021_v0 = vpop.f32.mrf.mxu0  ;;  %v3061_v1 = vpop.f32.mrf.mxu1  ;;  %3717 = vmatprep.subr.bf16.mxu0 %v4477_v55  ;;  %3757 = vmatprep.subr.bf16.mxu1 %v4479_v56  ;;  %v4385_v61 = vcombine.high %v419_v50, %v467_v51  ;;  %v4384_v5 = vcombine.low %v419_v50, %v467_v51 }
 0x202   :  { %v3060_v6 = vadd.f32 %v3059_v62, %v3020_v63  ;;  %3737 = vmatprep.mubr.bf16.mxu0 %v218_v59  ;;  %3777 = vmatprep.mubr.bf16.mxu1 %v220_v60  ;;  %v4387_v62 = vcombine.high %v420_v52, %v468_v53  ;;  %v351_v63 = vld [vmem:[#allocation4 + $0x3b0] sm:$0xff] }
 0x203   :  { %v3022_v7 = vpop.f32.mrf.mxu0  ;;  %v3062_v8 = vpop.f32.mrf.mxu1  ;;  %v375_v0 = vld [vmem:[#allocation4 + $0x470] sm:$0xff]  ;;  %v613_v1 = vunpack.c.l.s8.bf16 %v351_v63  ;;  %v614_v3 = vunpack.c.h.s8.bf16 %v351_v63 }
 0x204   :  { %v661_v2 = vunpack.c.l.s8.bf16 %v375_v0  ;;  %v662_v4 = vunpack.c.h.s8.bf16 %v375_v0 }
 0x205   :  { %v3023_v11 = vpop.f32.mrf.mxu0  ;;  %v3063_v12 = vpop.f32.mrf.mxu1 }
 0x206   :  { %v4581_v7 = vcombine.high %v613_v1, %v661_v2  ;;  %v4583_v8 = vcombine.high %v614_v3, %v662_v4  ;;  %v125_v11 = vld [vmem:[#allocation2 + $0x2a0] sm:$0xff]  ;;  %v127_v12 = vld [vmem:[#allocation2 + $0x2b0] sm:$0xff] }
 0x207   :  { %v221_v17 = vpack.c.bf16 %v125_v11, %v125_v11  ;;  %v223_v18 = vpack.c.bf16 %v127_v12, %v127_v12 }
 0x208   :  { %3718 = vmatpush1.bf16.xpose.msra.mxu0 %v4476_v9  ;;  %3758 = vmatpush1.bf16.xpose.msra.mxu1 %v4478_v10  ;;  %v303_v9 = vld [vmem:[#allocation4 + $0x230] sm:$0xff] }
 0x209   :  { %3719 = vmatprep.subr.bf16.mxu0 %v4381_v13  ;;  %3759 = vmatprep.subr.bf16.mxu1 %v4383_v14  ;;  %v327_v10 = vld [vmem:[#allocation4 + $0x2f0] sm:$0xff]  ;;  %v517_v13 = vunpack.c.l.s8.bf16 %v303_v9  ;;  %v518_v15 = vunpack.c.h.s8.bf16 %v303_v9  ;;  %v256_v9 = vld [vmem:[#allocation4 + $0xb8] sm:$0xff] }
 0x20a   :  { %v565_v14 = vunpack.c.l.s8.bf16 %v327_v10  ;;  %v566_v16 = vunpack.c.h.s8.bf16 %v327_v10  ;;  %v280_v10 = vld [vmem:[#allocation4 + $0x178] sm:$0xff]  ;;  %v424_v20 = vunpack.c.h.s8.bf16 %v256_v9 }
 0x20b   :  { %v471_v19 = vunpack.c.l.s8.bf16 %v280_v10 }
 0x20c   :  { %v4484_v41 = vcombine.low %v517_v13, %v565_v14  ;;  %v4486_v42 = vcombine.low %v518_v15, %v566_v16 }
 0x210   :  { %3720 = vmatpush1.bf16.xpose.msra.mxu0 %v4380_v21  ;;  %3760 = vmatpush1.bf16.xpose.msra.mxu1 %v4382_v22  ;;  %v4580_v21 = vcombine.low %v613_v1, %v661_v2  ;;  %v4582_v22 = vcombine.low %v614_v3, %v662_v4  ;;  %v134_v3 = vld [vmem:[#allocation2 + $0x2e8] sm:$0xff]  ;;  %v136_v4 = vld [vmem:[#allocation2 + $0x2f8] sm:$0xff] }
 0x211   :  { %3795 = vmatprep.subr.bf16.mxu0 %v4577_v23  ;;  %3835 = vmatprep.subr.bf16.mxu1 %v4579_v24  ;;  %v4485_v23 = vcombine.high %v517_v13, %v565_v14  ;;  %v4487_v24 = vcombine.high %v518_v15, %v566_v16  ;;  %v230_v11 = vpack.c.bf16 %v134_v3, %v134_v3 }
 0x212   :  { %v232_v12 = vpack.c.bf16 %v136_v4, %v136_v4  ;;  %v4043_v4 = vld [vmem:[%s4797_s2 + $0x28] sm:$0xff] }
 0x217   :  { %v3099_v45 = vpop.f32.mrf.mxu0  ;;  %v3139_v46 = vpop.f32.mrf.mxu1  ;;  %3738 = vmatmul.mubr.bf16.vlgmr.msra.gmra.mxu0 %v217_v33  ;;  %3778 = vmatmul.mubr.bf16.vlgmr.msra.gmra.mxu1 %v219_v34  ;;  %v421_v34 = vunpack.c.l.s8.bf16 %v255_v25 }
 0x218   :  { %v3100_v47 = vadd.f32 %v3099_v45, %v3060_v6  ;;  %3796 = vmatpush1.bf16.xpose.msra.mxu0 %v4576_v37  ;;  %3836 = vmatpush1.bf16.xpose.msra.mxu1 %v4578_v38  ;;  %v4386_v6 = vcombine.low %v420_v52, %v468_v53  ;;  %v470_v37 = vunpack.c.h.s8.bf16 %v279_v26 }
 0x219   :  { %v3101_v48 = vpop.f32.mrf.mxu0  ;;  %v3141_v49 = vpop.f32.mrf.mxu1  ;;  %3797 = vmatprep.subr.bf16.mxu0 %v4481_v39  ;;  %3837 = vmatprep.subr.bf16.mxu1 %v4483_v40  ;;  %v4389_v45 = vcombine.high %v421_v34, %v469_v35  ;;  %v4388_v53 = vcombine.low %v421_v34, %v469_v35  ;;  %v135_v34 = vld [vmem:[#allocation2 + $0x2f0] sm:$0xff] }
 0x21a   :  { %v3140_v54 = vadd.f32 %v3139_v46, %v3100_v47  ;;  %3817 = vmatprep.mubr.bf16.mxu0 %v222_v43  ;;  %3857 = vmatprep.mubr.bf16.mxu1 %v224_v44  ;;  %v4391_v46 = vcombine.high %v422_v36, %v470_v37  ;;  %v352_v47 = vld [vmem:[#allocation4 + $0x3b8] sm:$0xff] }
 0x21b   :  { %v3102_v55 = vpop.f32.mrf.mxu0  ;;  %v3142_v56 = vpop.f32.mrf.mxu1  ;;  %v376_v48 = vld [vmem:[#allocation4 + $0x478] sm:$0xff]  ;;  %v615_v49 = vunpack.c.l.s8.bf16 %v352_v47  ;;  %v616_v51 = vunpack.c.h.s8.bf16 %v352_v47 }
 0x21c   :  { %v663_v50 = vunpack.c.l.s8.bf16 %v376_v48  ;;  %v664_v52 = vunpack.c.h.s8.bf16 %v376_v48 }
 0x21d   :  { %v3103_v59 = vpop.f32.mrf.mxu0  ;;  %v3143_v60 = vpop.f32.mrf.mxu1 }
 0x21e   :  { %v4585_v55 = vcombine.high %v615_v49, %v663_v50  ;;  %v4587_v56 = vcombine.high %v616_v51, %v664_v52  ;;  %v129_v59 = vld [vmem:[#allocation2 + $0x2c0] sm:$0xff]  ;;  %v131_v60 = vld [vmem:[#allocation2 + $0x2d0] sm:$0xff] }
 0x21f   :  { %v225_v1 = vpack.c.bf16 %v129_v59, %v129_v59  ;;  %v227_v2 = vpack.c.bf16 %v131_v60, %v131_v60 }
 0x220   :  { %3798 = vmatpush1.bf16.xpose.msra.mxu0 %v4480_v57  ;;  %3838 = vmatpush1.bf16.xpose.msra.mxu1 %v4482_v58  ;;  %v304_v57 = vld [vmem:[#allocation4 + $0x238] sm:$0xff] }
 0x221   :  { %3799 = vmatprep.subr.bf16.mxu0 %v4385_v61  ;;  %3839 = vmatprep.subr.bf16.mxu1 %v4387_v62  ;;  %v328_v58 = vld [vmem:[#allocation4 + $0x2f8] sm:$0xff]  ;;  %v519_v61 = vunpack.c.l.s8.bf16 %v304_v57  ;;  %v520_v63 = vunpack.c.h.s8.bf16 %v304_v57  ;;  %v4696_v57 = vmov 0.0  }
 0x222   :  { %v567_v62 = vunpack.c.l.s8.bf16 %v328_v58  ;;  %v568_v0 = vunpack.c.h.s8.bf16 %v328_v58 }
 0x224   :  { %v4488_v25 = vcombine.low %v519_v61, %v567_v62  ;;  %v4490_v26 = vcombine.low %v520_v63, %v568_v0 }
 0x228   :  { %3800 = vmatpush1.bf16.xpose.msra.mxu0 %v4384_v5  ;;  %3840 = vmatpush1.bf16.xpose.msra.mxu1 %v4386_v6  ;;  %v4584_v5 = vcombine.low %v615_v49, %v663_v50  ;;  %v4586_v6 = vcombine.low %v616_v51, %v664_v52 }
 0x229   :  { %3875 = vmatprep.subr.bf16.mxu0 %v4581_v7  ;;  %3915 = vmatprep.subr.bf16.mxu1 %v4583_v8  ;;  %v4489_v7 = vcombine.high %v519_v61, %v567_v62  ;;  %v4491_v8 = vcombine.high %v520_v63, %v568_v0 }
 0x22f   :  { %v3179_v29 = vpop.f32.mrf.mxu0  ;;  %v3219_v30 = vpop.f32.mrf.mxu1  ;;  %3818 = vmatmul.mubr.bf16.vlgmr.msra.gmra.mxu0 %v221_v17  ;;  %3858 = vmatmul.mubr.bf16.vlgmr.msra.gmra.mxu1 %v223_v18  ;;  %v423_v18 = vunpack.c.l.s8.bf16 %v256_v9 }
 0x230   :  { %v3180_v31 = vadd.f32 %v3179_v29, %v3140_v54  ;;  %3876 = vmatpush1.bf16.xpose.msra.mxu0 %v4580_v21  ;;  %3916 = vmatpush1.bf16.xpose.msra.mxu1 %v4582_v22  ;;  %v4390_v54 = vcombine.low %v422_v36, %v470_v37  ;;  %v472_v21 = vunpack.c.h.s8.bf16 %v280_v10  ;;  %v231_v36 = vpack.c.bf16 %v135_v34, %v135_v34 }
 0x231   :  { %v3181_v32 = vpop.f32.mrf.mxu0  ;;  %v3221_v33 = vpop.f32.mrf.mxu1  ;;  %3877 = vmatprep.subr.bf16.mxu0 %v4485_v23  ;;  %3917 = vmatprep.subr.bf16.mxu1 %v4487_v24  ;;  %v4393_v29 = vcombine.high %v423_v18, %v471_v19 }
 0x232   :  { %v3220_v38 = vadd.f32 %v3219_v30, %v3180_v31  ;;  %3897 = vmatprep.mubr.bf16.mxu0 %v226_v27  ;;  %3937 = vmatprep.mubr.bf16.mxu1 %v228_v28  ;;  %v4395_v30 = vcombine.high %v424_v20, %v472_v21  ;;  %v4392_v31 = vcombine.low %v423_v18, %v471_v19  ;;  %v133_v33 = vld [vmem:[#allocation2 + $0x2e0] sm:$0xff] }
 0x233   :  { %v3182_v39 = vpop.f32.mrf.mxu0  ;;  %v3222_v40 = vpop.f32.mrf.mxu1  ;;  %v4394_v32 = vcombine.low %v424_v20, %v472_v21  ;;  %v229_v35 = vpack.c.bf16 %v133_v33, %v133_v33 }
 0x235   :  { %v3183_v43 = vpop.f32.mrf.mxu0  ;;  %v3223_v44 = vpop.f32.mrf.mxu1 }
 0x238   :  { %3878 = vmatpush1.bf16.xpose.msra.mxu0 %v4484_v41  ;;  %3918 = vmatpush1.bf16.xpose.msra.mxu1 %v4486_v42 }
 0x239   :  { %3879 = vmatprep.subr.bf16.mxu0 %v4389_v45  ;;  %3919 = vmatprep.subr.bf16.mxu1 %v4391_v46 }
 0x240   :  { %3880 = vmatpush1.bf16.xpose.msra.mxu0 %v4388_v53  ;;  %3920 = vmatpush1.bf16.xpose.msra.mxu1 %v4390_v54 }
 0x241   :  { %3955 = vmatprep.subr.bf16.mxu0 %v4585_v55  ;;  %3995 = vmatprep.subr.bf16.mxu1 %v4587_v56 }
 0x247   :  { %v3259_v13 = vpop.f32.mrf.mxu0  ;;  %v3299_v14 = vpop.f32.mrf.mxu1  ;;  %3898 = vmatmul.mubr.bf16.vlgmr.msra.gmra.mxu0 %v225_v1  ;;  %3938 = vmatmul.mubr.bf16.vlgmr.msra.gmra.mxu1 %v227_v2 }
 0x248   :  { %v3260_v15 = vadd.f32 %v3259_v13, %v3220_v38  ;;  %3956 = vmatpush1.bf16.xpose.msra.mxu0 %v4584_v5  ;;  %3996 = vmatpush1.bf16.xpose.msra.mxu1 %v4586_v6  ;;  %v4042_v5 = vld [vmem:[%s4797_s2 + $0x20] sm:$0xff]  ;;  %v4041_v6 = vld [vmem:[%s4797_s2 + $0x18] sm:$0xff] }
 0x249   :  { %v3261_v16 = vpop.f32.mrf.mxu0  ;;  %v3301_v17 = vpop.f32.mrf.mxu1  ;;  %3957 = vmatprep.subr.bf16.mxu0 %v4489_v7  ;;  %3997 = vmatprep.subr.bf16.mxu1 %v4491_v8  ;;  %v4040_v7 = vld [vmem:[%s4797_s2 + $0x10] sm:$0xff]  ;;  %v4039_v8 = vld [vmem:[%s4797_s2 + $0x8] sm:$0xff] }
 0x24a   :  { %v3300_v22 = vadd.f32 %v3299_v14, %v3260_v15  ;;  %3977 = vmatprep.mubr.bf16.mxu0 %v230_v11  ;;  %4017 = vmatprep.mubr.bf16.mxu1 %v232_v12  ;;  %v4038_v12 = vld [vmem:[%s4797_s2] sm:$0xff] }
 0x24b   :  { %v3262_v23 = vpop.f32.mrf.mxu0  ;;  %v3302_v24 = vpop.f32.mrf.mxu1  ;;  %v4126_v16 = vld [vmem:[%s4797_s2 + $0x40] sm:$0xff] }
 0x24d   :  { %v3263_v27 = vpop.f32.mrf.mxu0  ;;  %v3303_v28 = vpop.f32.mrf.mxu1 }
 0x250   :  { %3958 = vmatpush1.bf16.xpose.msra.mxu0 %v4488_v25  ;;  %3998 = vmatpush1.bf16.xpose.msra.mxu1 %v4490_v26 }
 0x251   :  { %3959 = vmatprep.subr.bf16.mxu0 %v4393_v29  ;;  %3999 = vmatprep.subr.bf16.mxu1 %v4395_v30 }
 0x258   :  { %3960 = vmatpush1.bf16.xpose.msra.mxu0 %v4392_v31  ;;  %4000 = vmatpush1.bf16.xpose.msra.mxu1 %v4394_v32 }
 0x259   :  { %4611 = vmatprep.subr.mxu0 %v4696_v57  ;;  %4626 = vmatprep.subr.mxu1 %v4696_v57 }
 0x25f   :  { %v3339_v37 = vpop.f32.mrf.mxu0  ;;  %v3379_v38 = vpop.f32.mrf.mxu1  ;;  %3978 = vmatmul.mubr.bf16.vlgmr.msra.gmra.mxu0 %v229_v35  ;;  %4018 = vmatmul.mubr.bf16.vlgmr.msra.gmra.mxu1 %v231_v36 }
 0x260   :  { %v3340_v39 = vadd.f32 %v3339_v37, %v3300_v22  ;;  %4612 = vmatpush3.msra.mxu0 %v4043_v4  ;;  %4623 = vmatprep.mubr.msk.f32.mxu0 %vm4697_vm0, %v4696_v57 }
 0x261   :  { %v3341_v40 = vpop.f32.mrf.mxu0  ;;  %v3381_v41 = vpop.f32.mrf.mxu1  ;;  %4613 = vmatprep.subr.mxu0 %v4696_v57  ;;  %4632 = vmatprep.mubr.msk.f32.mxu1 %vm4697_vm0, %v4696_v57 }
 0x262   :  { %v3380_v42 = vadd.f32 %v3379_v38, %v3340_v39  ;;  %4614 = vmatpush3.msra.mxu0 %v4042_v5  ;;  %4627 = vmatpush3.msra.mxu1 %v4126_v16  ;;  %v4589_v5 = vld [vmem:[%s4797_s2 + $0x59] ss:$0 sm:$0xff] }
 0x263   :  { %v3342_v43 = vpop.f32.mrf.mxu0  ;;  %v3382_v44 = vpop.f32.mrf.mxu1  ;;  %4615 = vmatprep.subr.mxu0 %v4696_v57  ;;  %4628 = vmatprep.subr.mxu1 %v4696_v57 }
 0x264   :  { %4616 = vmatpush3.msra.mxu0 %v4041_v6 }
 0x265   :  { %v3343_v45 = vpop.f32.mrf.mxu0  ;;  %v3383_v46 = vpop.f32.mrf.mxu1  ;;  %4617 = vmatprep.subr.mxu0 %v4696_v57 }
 0x266   :  { %4618 = vmatpush3.msra.mxu0 %v4040_v7 }
 0x267   :  { %4619 = vmatprep.subr.mxu0 %v4696_v57 }
 0x268   :  { %4620 = vmatpush3.msra.mxu0 %v4039_v8 }
 0x269   :  { %4621 = vmatprep.subr.mxu0 %v4696_v57 }
 0x26a   :  { %4622 = vmatpush3.msra.mxu0 %v4038_v12 }
 0x277   :  { %v3419_v47 = vpop.f32.mrf.mxu0  ;;  %v3459_v48 = vpop.f32.mrf.mxu1 }
 0x278   :  { %v3420_v49 = vadd.f32 %v3419_v47, %v3380_v42 }
 0x279   :  { %v3421_v50 = vpop.f32.mrf.mxu0  ;;  %v3461_v51 = vpop.f32.mrf.mxu1 }
 0x27a   :  { %v3460_v52 = vadd.f32 %v3459_v48, %v3420_v49 }
 0x27b   :  { %v3422_v53 = vpop.f32.mrf.mxu0  ;;  %v3462_v54 = vpop.f32.mrf.mxu1 }
 0x27d   :  { %v3423_v55 = vpop.f32.mrf.mxu0  ;;  %v3463_v56 = vpop.f32.mrf.mxu1 }
 0x28f   :  { %v3499_v58 = vpop.f32.mrf.mxu0  ;;  %v3539_v59 = vpop.f32.mrf.mxu1 }
 0x290   :  { %v3500_v60 = vadd.f32 %v3499_v58, %v3460_v52 }
 0x291   :  { %v3501_v61 = vpop.f32.mrf.mxu0  ;;  %v3541_v62 = vpop.f32.mrf.mxu1 }
 0x292   :  { %v3540_v63 = vadd.f32 %v3539_v59, %v3500_v60 }
 0x293   :  { %v3502_v0 = vpop.f32.mrf.mxu0  ;;  %v3542_v1 = vpop.f32.mrf.mxu1 }
 0x294   :  { %v4588_v1 = vld [vmem:[%s4797_s2 + $0x58] ss:$0 sm:$0xff] }
 0x295   :  { %v3503_v2 = vpop.f32.mrf.mxu0  ;;  %v3543_v3 = vpop.f32.mrf.mxu1 }
 0x2a7   :  { %v3579_v9 = vpop.f32.mrf.mxu0  ;;  %v3619_v10 = vpop.f32.mrf.mxu1 }
 0x2a8   :  { %v3580_v11 = vadd.f32 %v3579_v9, %v3540_v63 }
 0x2a9   :  { %v3581_v13 = vpop.f32.mrf.mxu0  ;;  %v3621_v14 = vpop.f32.mrf.mxu1 }
 0x2aa   :  { %v3620_v15 = vadd.f32 %v3619_v10, %v3580_v11  ;;  %v4125_v13 = vld [vmem:[%s4797_s2 + $0x38] sm:$0xff]  ;;  %v4124_v14 = vld [vmem:[%s4797_s2 + $0x30] sm:$0xff] }
 0x2ab   :  { %v3582_v17 = vpop.f32.mrf.mxu0  ;;  %v3622_v18 = vpop.f32.mrf.mxu1  ;;  %4629 = vmatpush3.msra.mxu1 %v4125_v13 }
 0x2ac   :  { %4630 = vmatprep.subr.mxu1 %v4696_v57 }
 0x2ad   :  { %v3583_v19 = vpop.f32.mrf.mxu0  ;;  %v3623_v20 = vpop.f32.mrf.mxu1  ;;  %4631 = vmatpush3.msra.mxu1 %v4124_v14 }
 0x2ae   :  { %4635 = vmatprep.subr.mxu1 %v4696_v57  ;;  %v4208_v20 = vld [vmem:[%s4797_s2 + $0x50] sm:$0xf] }
 0x2bf   :  { %v3659_v21 = vpop.f32.mrf.mxu0  ;;  %v3699_v22 = vpop.f32.mrf.mxu1 }
 0x2c0   :  { %v3660_v23 = vadd.f32 %v3659_v21, %v3620_v15  ;;  %v4590_v15 = vld [vmem:[%s4797_s2 + $0x5a] ss:$0 sm:$0xff]  ;;  %v4207_v21 = vld [vmem:[%s4797_s2 + $0x48] sm:$0xff] }
 0x2c1   :  { %v3661_v24 = vpop.f32.mrf.mxu0  ;;  %v3701_v25 = vpop.f32.mrf.mxu1 }
 0x2c2   :  { %v3700_v26 = vadd.f32 %v3699_v22, %v3660_v23  ;;  %v4592_v22 = vld [vmem:[%s4797_s2 + $0x5b] ss:$0 sm:$0xff] }
 0x2c3   :  { %v3662_v27 = vpop.f32.mrf.mxu0  ;;  %v3702_v28 = vpop.f32.mrf.mxu1 }
 0x2c4   :  { %v4594_v27 = vld [vmem:[%s4797_s2 + $0x5c] ss:$0 sm:$0xff] }
 0x2c5   :  { %v3663_v29 = vpop.f32.mrf.mxu0  ;;  %v3703_v30 = vpop.f32.mrf.mxu1 }
 0x2d7   :  { %v3739_v31 = vpop.f32.mrf.mxu0  ;;  %v3779_v32 = vpop.f32.mrf.mxu1 }
 0x2d8   :  { %v3740_v55 = vadd.f32 %v3739_v31, %v3700_v26 }
 0x2d9   :  { %v3741_v33 = vpop.f32.mrf.mxu0  ;;  %v3781_v34 = vpop.f32.mrf.mxu1 }
 0x2da   :  { %v3780_v56 = vadd.f32 %v3779_v32, %v3740_v55 }
 0x2db   :  { %v3742_v35 = vpop.f32.mrf.mxu0  ;;  %v3782_v36 = vpop.f32.mrf.mxu1 }
 0x2dd   :  { %v3743_v37 = vpop.f32.mrf.mxu0  ;;  %v3783_v38 = vpop.f32.mrf.mxu1 }
 0x2ef   :  { %v3819_v39 = vpop.f32.mrf.mxu0  ;;  %v3859_v40 = vpop.f32.mrf.mxu1 }
 0x2f0   :  { %v3820_v58 = vadd.f32 %v3819_v39, %v3780_v56 }
 0x2f1   :  { %v3821_v41 = vpop.f32.mrf.mxu0  ;;  %v3861_v42 = vpop.f32.mrf.mxu1 }
 0x2f2   :  { %v3860_v59 = vadd.f32 %v3859_v40, %v3820_v58 }
 0x2f3   :  { %v3822_v43 = vpop.f32.mrf.mxu0  ;;  %v3862_v44 = vpop.f32.mrf.mxu1 }
 0x2f5   :  { %v3823_v45 = vpop.f32.mrf.mxu0  ;;  %v3863_v46 = vpop.f32.mrf.mxu1 }
 0x307   :  { %v3899_v47 = vpop.f32.mrf.mxu0  ;;  %v3939_v48 = vpop.f32.mrf.mxu1 }
 0x308   :  { %v3900_v60 = vadd.f32 %v3899_v47, %v3860_v59 }
 0x309   :  { %v3901_v49 = vpop.f32.mrf.mxu0  ;;  %v3941_v50 = vpop.f32.mrf.mxu1 }
 0x30a   :  { %v3940_v61 = vadd.f32 %v3939_v48, %v3900_v60 }
 0x30b   :  { %v3902_v51 = vpop.f32.mrf.mxu0  ;;  %v3942_v52 = vpop.f32.mrf.mxu1 }
 0x30d   :  { %v3903_v53 = vpop.f32.mrf.mxu0  ;;  %v3943_v54 = vpop.f32.mrf.mxu1 }
 0x31f   :  { %v3979_v62 = vpop.f32.mrf.mxu0  ;;  %v4019_v63 = vpop.f32.mrf.mxu1 }
 0x320   :  { %v3980_v0 = vadd.f32 %v3979_v62, %v3940_v61 }
 0x321   :  { %v3981_v2 = vpop.f32.mrf.mxu0  ;;  %v4021_v3 = vpop.f32.mrf.mxu1 }
 0x322   :  { %v4020_v4 = vadd.f32 %v4019_v63, %v3980_v0 }
 0x323   :  { %v3982_v6 = vpop.f32.mrf.mxu0  ;;  %v4022_v7 = vpop.f32.mrf.mxu1 }
 0x324   :  { %v4031_v8 = vmul.f32 %v4588_v1, %v4020_v4 }
 0x325   :  { %v3983_v9 = vpop.f32.mrf.mxu0  ;;  %v4023_v10 = vpop.f32.mrf.mxu1 }
 0x326   :  { %v4036_v11 = vadd.f32 %v4589_v5, %v4031_v8 }
 0x328   :  { %v4037_v12 = vmax.f32 %v4036_v11, 0.0 }
 0x32a   :  { %4624 = vmatmul.mubr.msk.f32.vlgmr.msra.gmra.mxu0 %vm4049_vm1, %v4037_v12 }
 0x3ea   :  { %v4119_v16 = vpop.f32.mrf.mxu0 }
 0x3eb   :  { %v4120_v17 = vadd.f32 %v4590_v15, %v4119_v16 }
 0x3ec   :  { %v4625_v18 = vpop.f32.mrf.mxu0 }
 0x3ed   :  { %v4123_v19 = vmax.f32 %v4120_v17, 0.0 }
 0x3ef   :  { %4633 = vmatmul.mubr.msk.f32.vlgmr.msra.gmra.mxu1 %vm4132_vm2, %v4123_v19 }
 0x3f0   :  { %4639 = vmatprep.mubr.msk.f32.mxu1 %vm4697_vm0, %v4696_v57  ;;  %4636 = vmatpush3.msk.msra.mxu1 %vm4218_vm3, %v4208_v20 }
 0x3f1   :  { %4637 = vmatprep.subr.mxu1 %v4696_v57 }
 0x3f2   :  { %4638 = vmatpush3.msra.mxu1 %v4207_v21 }
 0x4af   :  { %v4202_v23 = vpop.f32.mrf.mxu1 }
 0x4b0   :  { %v4203_v24 = vadd.f32 %v4592_v22, %v4202_v23 }
 0x4b1   :  { %v4634_v25 = vpop.f32.mrf.mxu1 }
 0x4b2   :  { %v4206_v26 = vmax.f32 %v4203_v24, 0.0 }
 0x4b4   :  { %4640 = vmatmul.mubr.msk.f32.vlgmr.msra.gmra.mxu1 %vm4214_vm4, %v4206_v26 }
 0x574   :  { %v4288_v57 = vpop.f32.mrf.mxu1 }
 0x575   :  { %v4289_v28 = vadd.f32 %v4594_v27, %v4288_v57 }
 0x576   :  { %v4641_v29 = vpop.f32.mrf.mxu1 }
 0x577   :  { %4293 = vst.msk [vmem:[%s4798_s3] sm:$0xff] %vm4292_vm5, %v4289_v28 }
 0x578   :  { %4298 = vsyncpa [#allocation3], 1 }
 0x579   :  { %4299 = vsyncpa [#allocation5], 1 }

</bundles_post_ra>
